<compile_context>
chip_gen: v7x
topology: tpu7x:2x2x1
jax: 0.10.0
libtpu: 0.0.40
codegen_flags: <defaults>
</compile_context>

<pallas_src>
import functools

import jax
import jax.numpy as jnp
from jax.experimental import pallas as pl
from jax.experimental.pallas import tpu as pltpu

LANES = 128      # matmul output lane width (one vreg of lanes)
GROUP = 32       # lane stride between the 4 folded pool-window offsets
TM1 = 256        # conv1 row tile: rows = (n, ph, pw), multiple of 16 (bf16 LHS sublane tile)
TM2 = 256        # conv2 row tile: rows = (n, pooled position)
TN = 16          # classifier batch tile
A1_LANES = 8     # stored lane width of conv1 stage output (6 real channels)
A2_LANES = 16    # stored lane width of conv2 stage output (16 real channels)


# ----------------------------------------------------------------------------
# Pallas kernels
# ----------------------------------------------------------------------------
def conv_pool_kernel(p_ref, w_ref, b_ref, o_ref):
    """Conv (im2col, BN folded) + MaxPool2d(2,2) + bias + ReLU for one row tile.

    p_ref: (TM, K)    bf16 patches; the 4 pool offsets are concatenated along K.
    w_ref: (K, 128)   bf16 block-diagonal weight; offset e writes lanes [32e, 32e+C).
    b_ref: (1, 128)   f32 folded bias (real channels in lanes [0, C)).
    o_ref: (TM, C')   f32; MaxPool over offsets = max over the 4 lane groups (lane rolls).

    INVARIANT: bias+ReLU may run after the max only because the folded bias is constant
    across the 2x2 window and ReLU is monotone.
    """
    y = jnp.dot(p_ref[...], w_ref[...], preferred_element_type=jnp.float32)   # (TM, 128)
    pooled = jnp.maximum(jnp.maximum(y, pltpu.roll(y, shift=GROUP, axis=1)),
                         jnp.maximum(pltpu.roll(y, shift=2 * GROUP, axis=1),
                                     pltpu.roll(y, shift=3 * GROUP, axis=1)))
    act = jnp.maximum(pooled + b_ref[...], 0.0)
    o_ref[...] = act[:, :o_ref.shape[1]]


def classifier_kernel(num_classes, f_ref, w1_ref, b1_ref, w2_ref, b2_ref,
                      w3_ref, b3_ref, o_ref):
    """fc1(+BN+ReLU) -> fc2(+BN+ReLU) -> fc3 -> log_softmax for one batch tile.

    f_ref: (TN, 400) bf16 flattened features (PyTorch (c,h,w) order).
    w*_ref: bf16, lane-padded to 128; b*_ref: (1,128) f32.
    Dropout is identity (eval mode).  Real classes live in lanes [0, num_classes).
    Padded batch rows (zero features) produce finite garbage that is sliced away outside.
    """
    h = jnp.dot(f_ref[...], w1_ref[...], preferred_element_type=jnp.float32)   # K=400 matmul
    h = jnp.maximum(h + b1_ref[...], 0.0)
    h = jnp.dot(h.astype(jnp.bfloat16), w2_ref[...], preferred_element_type=jnp.float32)
    h = jnp.maximum(h + b2_ref[...], 0.0)
    logits = jnp.dot(h.astype(jnp.bfloat16), w3_ref[...],
                     preferred_element_type=jnp.float32) + b3_ref[...]
    # log_softmax over the real classes only (padded lanes masked out), all in f32.
    lane = jax.lax.broadcasted_iota(jnp.int32, logits.shape, 1)
    logits = jnp.where(lane < num_classes, logits, -1e30)
    mx = jnp.max(logits, axis=-1, keepdims=True)
    lse = mx + jnp.log(jnp.sum(jnp.exp(logits - mx), axis=-1, keepdims=True))
    o_ref[...] = logits - lse


def _conv_pool_call(patches, w_bd, bias, out_lanes, tile):
    rows, k = patches.shape
    return pl.pallas_call(
        conv_pool_kernel,
        out_shape=jax.ShapeDtypeStruct((rows, out_lanes), jnp.float32),
        grid=(rows // tile,),
        in_specs=[pl.BlockSpec((tile, k), lambda i: (i, 0)),
                  pl.BlockSpec(w_bd.shape, lambda i: (0, 0)),
                  pl.BlockSpec(bias.shape, lambda i: (0, 0))],
        out_specs=pl.BlockSpec((tile, out_lanes), lambda i: (i, 0)),
        compiler_params=pltpu.CompilerParams(dimension_semantics=("parallel",)),
    )(patches, w_bd, bias)


# ----------------------------------------------------------------------------
# Weight preparation (BN folding, block-diagonal fold, bf16) -- ONCE, outside jit.
# ----------------------------------------------------------------------------
def _bn_scale_shift(bn, eps=1e-5):
    gamma, beta, mean, var = bn
    scale = gamma / jnp.sqrt(var + eps)
    return scale, beta - mean * scale


def _pad2(a, rows, cols, dtype=jnp.float32):
    out = jnp.zeros((rows, cols), dtype)
    return out.at[:a.shape[0], :a.shape[1]].set(a.astype(dtype))


def _block_diag4(w):
    """(K, C) per-offset weight -> (4K, 128): offset e -> rows [eK,(e+1)K), lanes [32e,32e+C)."""
    k, c = w.shape
    out = jnp.zeros((4 * k, LANES), jnp.float32)
    for e in range(4):
        out = out.at[e * k:(e + 1) * k, e * GROUP:e * GROUP + c].set(w)
    return out


def prepare_weights(params):
    """Fold eval-mode BatchNorm into conv/linear weights, build block-diagonal conv weights
    (4 pool offsets folded into K), pad feature dims to 128 lanes, cast MXU operands to bf16."""
    s1, t1 = _bn_scale_shift(params["bn1"])
    w1 = params["conv1_w"].reshape(6, 25).T * s1[None, :]            # (25, 6),  K = di*5+dj
    b1 = params["conv1_b"] * s1 + t1

    s2, t2 = _bn_scale_shift(params["bn2"])
    w2 = params["conv2_w"].reshape(16, 150).T * s2[None, :]          # (150, 16), K = ci*25+di*5+dj
    b2 = params["conv2_b"] * s2 + t2

    s3, t3 = _bn_scale_shift(params["bn3"])
    f1 = params["fc1_w"].T * s3[None, :]                             # (400, 120), in = c*25+pos
    g1 = params["fc1_b"] * s3 + t3

    s4, t4 = _bn_scale_shift(params["bn4"])
    f2 = params["fc2_w"].T * s4[None, :]                             # (120, 84)
    g2 = params["fc2_b"] * s4 + t4

    f3 = params["fc3_w"].T                                           # (84, num_classes)
    g3 = params["fc3_b"]

    return {
        "w1": _block_diag4(w1).astype(jnp.bfloat16), "b1": _pad2(b1[None, :], 1, LANES),
        "w2": _block_diag4(w2).astype(jnp.bfloat16), "b2": _pad2(b2[None, :], 1, LANES),
        "f1": _pad2(f1, 400, LANES, jnp.bfloat16),   "g1": _pad2(g1[None, :], 1, LANES),
        "f2": _pad2(f2, LANES, LANES, jnp.bfloat16), "g2": _pad2(g2[None, :], 1, LANES),
        "f3": _pad2(f3, LANES, LANES, jnp.bfloat16), "g3": _pad2(g3[None, :], 1, LANES),
    }


# ----------------------------------------------------------------------------
# Jitted glue: im2col patch gathers (pure rearrangement, fused by XLA).
# ----------------------------------------------------------------------------
def _conv1_patches(x, m_pad):
    """(N,1,32,32) -> (m_pad, 100) bf16; rows=(n,ph,pw), K = (2eh+ew)*25 + di*5 + dj."""
    n = x.shape[0]
    xs = x[:, 0]                                                       # (N, 32, 32)
    cols = jnp.stack([xs[:, di:di + 28, dj:dj + 28]
                      for di in range(5) for dj in range(5)], axis=-1)  # (N, 28, 28, 25)
    cols = cols.reshape(n, 14, 2, 14, 2, 25)                           # (n, ph, eh, pw, ew, k)
    cols = cols.transpose(0, 1, 3, 2, 4, 5)                            # (n, ph, pw, eh, ew, k)
    p = cols.reshape(n * 196, 100)
    p = jnp.pad(p, ((0, m_pad - n * 196), (0, 0)))
    return p.astype(jnp.bfloat16)


def _conv2_patches(a1, r_pad):
    """(N,14,14,6) -> (r_pad, 600) bf16; rows=(n, qh*5+qw), K = e*150 + ci*25 + di*5 + dj."""
    n = a1.shape[0]
    cols = jnp.stack([a1[:, di:di + 10, dj:dj + 10, :]
                      for di in range(5) for dj in range(5)], axis=-1)  # (N, 10, 10, 6, 25)
    cols = cols.reshape(n, 10, 10, 150)                                 # k' = ci*25 + di*5 + dj
    cols = cols.reshape(n, 5, 2, 5, 2, 150)                             # (n, qh, eh, qw, ew, k')
    cols = cols.transpose(0, 1, 3, 2, 4, 5)                             # (n, qh, qw, eh, ew, k')
    p = cols.reshape(n * 25, 600)
    p = jnp.pad(p, ((0, r_pad - n * 25), (0, 0)))
    return p.astype(jnp.bfloat16)


# ----------------------------------------------------------------------------
# Full forward pass (LeNet-5 `Net.forward`, eval mode)
# ----------------------------------------------------------------------------
@functools.partial(jax.jit, static_argnames=("num_classes",))
def net_forward(x, prep, *, num_classes):
    n = x.shape[0]

    # layer1: Conv2d(1,6,5) + BatchNorm2d + ReLU + MaxPool2d(2,2)
    m = n * 14 * 14
    m_pad = ((m + TM1 - 1) // TM1) * TM1
    p1 = _conv1_patches(x, m_pad)
    a1_flat = _conv_pool_call(p1, prep["w1"], prep["b1"], A1_LANES, TM1)   # (m_pad, 8) f32
    a1 = a1_flat[:m, :6].reshape(n, 14, 14, 6)

    # layer2: Conv2d(6,16,5) + BatchNorm2d + ReLU + MaxPool2d(2,2)
    r = n * 25
    r_pad = ((r + TM2 - 1) // TM2) * TM2
    p2 = _conv2_patches(a1, r_pad)
    a2_flat = _conv_pool_call(p2, prep["w2"], prep["b2"], A2_LANES, TM2)   # (r_pad, 16) f32

    # avgpool: AdaptiveAvgPool2d((5,5)) is the identity here (feature map is already 5x5).
    # flatten: (16,5,5) -> 400 in PyTorch (c,h,w) order, done as tiny XLA glue so fc1 is a
    # single K=400 matmul inside the classifier kernel.
    feats = a2_flat[:r, :16].reshape(n, 25, 16).transpose(0, 2, 1).reshape(n, 400)
    n_pad = ((n + TN - 1) // TN) * TN
    feats = jnp.pad(feats, ((0, n_pad - n), (0, 0))).astype(jnp.bfloat16)

    kern = functools.partial(classifier_kernel, num_classes)
    out_pad = pl.pallas_call(
        kern,
        out_shape=jax.ShapeDtypeStruct((n_pad, LANES), jnp.float32),
        grid=(n_pad // TN,),
        in_specs=[pl.BlockSpec((TN, 400), lambda i: (i, 0))]
                 + [pl.BlockSpec(prep[k].shape, lambda i: (0, 0))
                    for k in ("f1", "g1", "f2", "g2", "f3", "g3")],
        out_specs=pl.BlockSpec((TN, LANES), lambda i: (i, 0)),
        compiler_params=pltpu.CompilerParams(dimension_semantics=("parallel",)),
    )(feats, prep["f1"], prep["g1"], prep["f2"], prep["g2"], prep["f3"], prep["g3"])
    return out_pad[:n, :num_classes]


# ----------------------------------------------------------------------------
# Deterministic parameter construction
# ----------------------------------------------------------------------------
def init_bn(key, dim):
    k1, k2, k3, k4 = jax.random.split(key, 4)
    gamma = 1.0 + 0.1 * jax.random.normal(k1, (dim,), jnp.float32)
    beta = 0.1 * jax.random.normal(k2, (dim,), jnp.float32)
    mean = 0.1 * jax.random.normal(k3, (dim,), jnp.float32)
    var = jax.random.uniform(k4, (dim,), jnp.float32, minval=0.5, maxval=1.5)
    return gamma, beta, mean, var


def init_params(key, num_classes):
    ks = list(jax.random.split(key, 16))
    nrm = lambda k, shape: 0.1 * jax.random.normal(k, shape, dtype=jnp.float32)
    return {
        "conv1_w": nrm(ks[0], (6, 1, 5, 5)),
        "conv1_b": nrm(ks[1], (6,)),
        "bn1": init_bn(ks[2], 6),
        "conv2_w": nrm(ks[3], (16, 6, 5, 5)),
        "conv2_b": nrm(ks[4], (16,)),
        "bn2": init_bn(ks[5], 16),
        "fc1_w": nrm(ks[6], (120, 400)),
        "fc1_b": nrm(ks[7], (120,)),
        "bn3": init_bn(ks[8], 120),
        "fc2_w": nrm(ks[9], (84, 120)),
        "fc2_b": nrm(ks[10], (84,)),
        "bn4": init_bn(ks[11], 84),
        "fc3_w": nrm(ks[12], (num_classes, 84)),
        "fc3_b": nrm(ks[13], (num_classes,)),
    }


if __name__ == "__main__":
    num_classes = 10
    key = jax.random.PRNGKey(0)
    kx, kp = jax.random.split(key)
    x = jax.random.normal(kx, (2, 1, 32, 32), dtype=jnp.float32)  # NCHW LeNet-5 input
    params = init_params(kp, num_classes)
    prep = prepare_weights(params)   # BN folding / block-diag / bf16 done once, off the hot path

    out = net_forward(x, prep, num_classes=num_classes)
    out = jax.block_until_ready(out)

    assert out.shape == (2, num_classes)
    assert bool(jnp.all(jnp.isfinite(out)))
    # log_softmax rows should (numerically) sum to 1 after exp
    assert bool(jnp.allclose(jnp.sum(jnp.exp(out), axis=1), 1.0, atol=1e-4))
    print("KERNEL_OK")
</pallas_src>

<mosaic_0001>
module attributes {stable_mosaic.version = 11 : i64} {
  func.func @conv_pool_kernel(%arg0: i32, %arg1: memref<256x100xbf16, #tpu.memory_space<vmem>>, %arg2: memref<100x128xbf16, #tpu.memory_space<vmem>>, %arg3: memref<1x128xf32, #tpu.memory_space<vmem>>, %arg4: memref<256x8xf32, #tpu.memory_space<vmem>>) attributes {dimension_semantics = [#tpu.dimension_semantics<parallel>], iteration_bounds = array<i64: 2>, scalar_prefetch = 0 : i64, scratch_operands = 0 : i64, tpu.core_type = #tpu.core_type<tc>, window_params = [{transform_indices = @transform_0, window_bounds = array<i64: 256, 100>}, {pipeline_mode = #tpu.pipeline_mode<synchronous>, transform_indices = @transform_1, window_bounds = array<i64: 100, 128>}, {pipeline_mode = #tpu.pipeline_mode<synchronous>, transform_indices = @transform_2, window_bounds = array<i64: 1, 128>}, {transform_indices = @transform_3, window_bounds = array<i64: 256, 8>}]} {
    %c0 = arith.constant 0 : index
    %c0_0 = arith.constant 0 : index
    %0 = vector.load %arg1[%c0, %c0_0] : memref<256x100xbf16, #tpu.memory_space<vmem>>, vector<256x100xbf16>
    %c0_1 = arith.constant 0 : index
    %c0_2 = arith.constant 0 : index
    %1 = vector.load %arg2[%c0_1, %c0_2] : memref<100x128xbf16, #tpu.memory_space<vmem>>, vector<100x128xbf16>
    %cst = arith.constant dense<0.000000e+00> : vector<256x128xf32>
    %2 = tpu.matmul %0, %1, %cst {dimension_numbers = #tpu.dot_dimension_numbers<[1], [0], [0], [1], [0, 0, 1, 1], [], []>} : vector<256x100xbf16>, vector<100x128xbf16>, vector<256x128xf32> -> vector<256x128xf32>
    %c32_i32 = arith.constant 32 : i32
    %3 = tpu.dynamic_rotate %2 by %c32_i32 dim 1 : vector<256x128xf32>, i32 -> vector<256x128xf32>
    %4 = arith.maximumf %2, %3 : vector<256x128xf32>
    %c64_i32 = arith.constant 64 : i32
    %5 = tpu.dynamic_rotate %2 by %c64_i32 dim 1 : vector<256x128xf32>, i32 -> vector<256x128xf32>
    %c96_i32 = arith.constant 96 : i32
    %6 = tpu.dynamic_rotate %2 by %c96_i32 dim 1 : vector<256x128xf32>, i32 -> vector<256x128xf32>
    %7 = arith.maximumf %5, %6 : vector<256x128xf32>
    %8 = arith.maximumf %4, %7 : vector<256x128xf32>
    %c0_3 = arith.constant 0 : index
    %c0_4 = arith.constant 0 : index
    %9 = vector.load %arg3[%c0_3, %c0_4] : memref<1x128xf32, #tpu.memory_space<vmem>>, vector<1x128xf32>
    %10 = vector.broadcast %9 : vector<1x128xf32> to vector<256x128xf32>
    %11 = arith.addf %8, %10 : vector<256x128xf32>
    %cst_5 = arith.constant 0.000000e+00 : f32
    %12 = vector.broadcast %cst_5 : f32 to vector<256x128xf32>
    %13 = arith.maximumf %11, %12 : vector<256x128xf32>
    %14 = vector.extract_strided_slice %13 {offsets = [0, 0], sizes = [256, 8], strides = [1, 1]} : vector<256x128xf32> to vector<256x8xf32>
    %c0_6 = arith.constant 0 : index
    %c0_7 = arith.constant 0 : index
    %15 = vector.load %arg4[%c0_6, %c0_7] : memref<256x8xf32, #tpu.memory_space<vmem>>, vector<256x8xf32>
    tpu.vector_store %arg4[%c0_6, %c0_7], %14 {strides = array<i32>} : memref<256x8xf32, #tpu.memory_space<vmem>>, vector<256x8xf32>,
    return
  }
  func.func @transform_0(%arg0: i32) -> (i32, i32) {
    %c0_i32 = arith.constant 0 : i32
    %c0_i32_0 = arith.constant 0 : i32
    return %arg0, %c0_i32 : i32, i32
  }
  func.func @transform_1(%arg0: i32) -> (i32, i32) {
    %c0_i32 = arith.constant 0 : i32
    %c0_i32_0 = arith.constant 0 : i32
    %c0_i32_1 = arith.constant 0 : i32
    return %c0_i32, %c0_i32_0 : i32, i32
  }
  func.func @transform_2(%arg0: i32) -> (i32, i32) {
    %c0_i32 = arith.constant 0 : i32
    %c0_i32_0 = arith.constant 0 : i32
    %c0_i32_1 = arith.constant 0 : i32
    return %c0_i32, %c0_i32_0 : i32, i32
  }
  func.func @transform_3(%arg0: i32) -> (i32, i32) {
    %c0_i32 = arith.constant 0 : i32
    %c0_i32_0 = arith.constant 0 : i32
    return %arg0, %c0_i32 : i32, i32
  }
}

module attributes {stable_mosaic.version = 11 : i64} {
  func.func @conv_pool_kernel(%arg0: i32, %arg1: memref<256x600xbf16, #tpu.memory_space<vmem>>, %arg2: memref<600x128xbf16, #tpu.memory_space<vmem>>, %arg3: memref<1x128xf32, #tpu.memory_space<vmem>>, %arg4: memref<256x16xf32, #tpu.memory_space<vmem>>) attributes {dimension_semantics = [#tpu.dimension_semantics<parallel>], iteration_bounds = array<i64: 1>, scalar_prefetch = 0 : i64, scratch_operands = 0 : i64, tpu.core_type = #tpu.core_type<tc>, window_params = [{transform_indices = @transform_0, window_bounds = array<i64: 256, 600>}, {pipeline_mode = #tpu.pipeline_mode<synchronous>, transform_indices = @transform_1, window_bounds = array<i64: 600, 128>}, {pipeline_mode = #tpu.pipeline_mode<synchronous>, transform_indices = @transform_2, window_bounds = array<i64: 1, 128>}, {transform_indices = @transform_3, window_bounds = array<i64: 256, 16>}]} {
    %c0 = arith.constant 0 : index
    %c0_0 = arith.constant 0 : index
    %0 = vector.load %arg1[%c0, %c0_0] : memref<256x600xbf16, #tpu.memory_space<vmem>>, vector<256x600xbf16>
    %c0_1 = arith.constant 0 : index
    %c0_2 = arith.constant 0 : index
    %1 = vector.load %arg2[%c0_1, %c0_2] : memref<600x128xbf16, #tpu.memory_space<vmem>>, vector<600x128xbf16>
    %cst = arith.constant dense<0.000000e+00> : vector<256x128xf32>
    %2 = tpu.matmul %0, %1, %cst {dimension_numbers = #tpu.dot_dimension_numbers<[1], [0], [0], [1], [0, 0, 1, 1], [], []>} : vector<256x600xbf16>, vector<600x128xbf16>, vector<256x128xf32> -> vector<256x128xf32>
    %c32_i32 = arith.constant 32 : i32
    %3 = tpu.dynamic_rotate %2 by %c32_i32 dim 1 : vector<256x128xf32>, i32 -> vector<256x128xf32>
    %4 = arith.maximumf %2, %3 : vector<256x128xf32>
    %c64_i32 = arith.constant 64 : i32
    %5 = tpu.dynamic_rotate %2 by %c64_i32 dim 1 : vector<256x128xf32>, i32 -> vector<256x128xf32>
    %c96_i32 = arith.constant 96 : i32
    %6 = tpu.dynamic_rotate %2 by %c96_i32 dim 1 : vector<256x128xf32>, i32 -> vector<256x128xf32>
    %7 = arith.maximumf %5, %6 : vector<256x128xf32>
    %8 = arith.maximumf %4, %7 : vector<256x128xf32>
    %c0_3 = arith.constant 0 : index
    %c0_4 = arith.constant 0 : index
    %9 = vector.load %arg3[%c0_3, %c0_4] : memref<1x128xf32, #tpu.memory_space<vmem>>, vector<1x128xf32>
    %10 = vector.broadcast %9 : vector<1x128xf32> to vector<256x128xf32>
    %11 = arith.addf %8, %10 : vector<256x128xf32>
    %cst_5 = arith.constant 0.000000e+00 : f32
    %12 = vector.broadcast %cst_5 : f32 to vector<256x128xf32>
    %13 = arith.maximumf %11, %12 : vector<256x128xf32>
    %14 = vector.extract_strided_slice %13 {offsets = [0, 0], sizes = [256, 16], strides = [1, 1]} : vector<256x128xf32> to vector<256x16xf32>
    %c0_6 = arith.constant 0 : index
    %c0_7 = arith.constant 0 : index
    %15 = vector.load %arg4[%c0_6, %c0_7] : memref<256x16xf32, #tpu.memory_space<vmem>>, vector<256x16xf32>
    tpu.vector_store %arg4[%c0_6, %c0_7], %14 {strides = array<i32>} : memref<256x16xf32, #tpu.memory_space<vmem>>, vector<256x16xf32>,
    return
  }
  func.func @transform_0(%arg0: i32) -> (i32, i32) {
    %c0_i32 = arith.constant 0 : i32
    %c0_i32_0 = arith.constant 0 : i32
    return %arg0, %c0_i32 : i32, i32
  }
  func.func @transform_1(%arg0: i32) -> (i32, i32) {
    %c0_i32 = arith.constant 0 : i32
    %c0_i32_0 = arith.constant 0 : i32
    %c0_i32_1 = arith.constant 0 : i32
    return %c0_i32, %c0_i32_0 : i32, i32
  }
  func.func @transform_2(%arg0: i32) -> (i32, i32) {
    %c0_i32 = arith.constant 0 : i32
    %c0_i32_0 = arith.constant 0 : i32
    %c0_i32_1 = arith.constant 0 : i32
    return %c0_i32, %c0_i32_0 : i32, i32
  }
  func.func @transform_3(%arg0: i32) -> (i32, i32) {
    %c0_i32 = arith.constant 0 : i32
    %c0_i32_0 = arith.constant 0 : i32
    return %arg0, %c0_i32 : i32, i32
  }
}

module attributes {stable_mosaic.version = 11 : i64} {
  func.func @classifier_kernel(%arg0: i32, %arg1: memref<16x400xbf16, #tpu.memory_space<vmem>>, %arg2: memref<400x128xbf16, #tpu.memory_space<vmem>>, %arg3: memref<1x128xf32, #tpu.memory_space<vmem>>, %arg4: memref<128x128xbf16, #tpu.memory_space<vmem>>, %arg5: memref<1x128xf32, #tpu.memory_space<vmem>>, %arg6: memref<128x128xbf16, #tpu.memory_space<vmem>>, %arg7: memref<1x128xf32, #tpu.memory_space<vmem>>, %arg8: memref<16x128xf32, #tpu.memory_space<vmem>>) attributes {dimension_semantics = [#tpu.dimension_semantics<parallel>], iteration_bounds = array<i64: 1>, scalar_prefetch = 0 : i64, scratch_operands = 0 : i64, tpu.core_type = #tpu.core_type<tc>, window_params = [{transform_indices = @transform_0, window_bounds = array<i64: 16, 400>}, {pipeline_mode = #tpu.pipeline_mode<synchronous>, transform_indices = @transform_1, window_bounds = array<i64: 400, 128>}, {pipeline_mode = #tpu.pipeline_mode<synchronous>, transform_indices = @transform_2, window_bounds = array<i64: 1, 128>}, {pipeline_mode = #tpu.pipeline_mode<synchronous>, transform_indices = @transform_3, window_bounds = array<i64: 128, 128>}, {pipeline_mode = #tpu.pipeline_mode<synchronous>, transform_indices = @transform_4, window_bounds = array<i64: 1, 128>}, {pipeline_mode = #tpu.pipeline_mode<synchronous>, transform_indices = @transform_5, window_bounds = array<i64: 128, 128>}, {pipeline_mode = #tpu.pipeline_mode<synchronous>, transform_indices = @transform_6, window_bounds = array<i64: 1, 128>}, {transform_indices = @transform_7, window_bounds = array<i64: 16, 128>}]} {
    %c0 = arith.constant 0 : index
    %c0_0 = arith.constant 0 : index
    %0 = vector.load %arg1[%c0, %c0_0] : memref<16x400xbf16, #tpu.memory_space<vmem>>, vector<16x400xbf16>
    %c0_1 = arith.constant 0 : index
    %c0_2 = arith.constant 0 : index
    %1 = vector.load %arg2[%c0_1, %c0_2] : memref<400x128xbf16, #tpu.memory_space<vmem>>, vector<400x128xbf16>
    %cst = arith.constant dense<0.000000e+00> : vector<16x128xf32>
    %2 = tpu.matmul %0, %1, %cst {dimension_numbers = #tpu.dot_dimension_numbers<[1], [0], [0], [1], [0, 0, 1, 1], [], []>} : vector<16x400xbf16>, vector<400x128xbf16>, vector<16x128xf32> -> vector<16x128xf32>
    %c0_3 = arith.constant 0 : index
    %c0_4 = arith.constant 0 : index
    %3 = vector.load %arg3[%c0_3, %c0_4] : memref<1x128xf32, #tpu.memory_space<vmem>>, vector<1x128xf32>
    %4 = vector.broadcast %3 : vector<1x128xf32> to vector<16x128xf32>
    %5 = arith.addf %2, %4 : vector<16x128xf32>
    %cst_5 = arith.constant 0.000000e+00 : f32
    %6 = vector.broadcast %cst_5 : f32 to vector<16x128xf32>
    %7 = arith.maximumf %5, %6 : vector<16x128xf32>
    %8 = arith.truncf %7 : vector<16x128xf32> to vector<16x128xbf16>
    %c0_6 = arith.constant 0 : index
    %c0_7 = arith.constant 0 : index
    %9 = vector.load %arg4[%c0_6, %c0_7] : memref<128x128xbf16, #tpu.memory_space<vmem>>, vector<128x128xbf16>
    %cst_8 = arith.constant dense<0.000000e+00> : vector<16x128xf32>
    %10 = tpu.matmul %8, %9, %cst_8 {dimension_numbers = #tpu.dot_dimension_numbers<[1], [0], [0], [1], [0, 0, 1, 1], [], []>} : vector<16x128xbf16>, vector<128x128xbf16>, vector<16x128xf32> -> vector<16x128xf32>
    %c0_9 = arith.constant 0 : index
    %c0_10 = arith.constant 0 : index
    %11 = vector.load %arg5[%c0_9, %c0_10] : memref<1x128xf32, #tpu.memory_space<vmem>>, vector<1x128xf32>
    %12 = vector.broadcast %11 : vector<1x128xf32> to vector<16x128xf32>
    %13 = arith.addf %10, %12 : vector<16x128xf32>
    %cst_11 = arith.constant 0.000000e+00 : f32
    %14 = vector.broadcast %cst_11 : f32 to vector<16x128xf32>
    %15 = arith.maximumf %13, %14 : vector<16x128xf32>
    %16 = arith.truncf %15 : vector<16x128xf32> to vector<16x128xbf16>
    %c0_12 = arith.constant 0 : index
    %c0_13 = arith.constant 0 : index
    %17 = vector.load %arg6[%c0_12, %c0_13] : memref<128x128xbf16, #tpu.memory_space<vmem>>, vector<128x128xbf16>
    %cst_14 = arith.constant dense<0.000000e+00> : vector<16x128xf32>
    %18 = tpu.matmul %16, %17, %cst_14 {dimension_numbers = #tpu.dot_dimension_numbers<[1], [0], [0], [1], [0, 0, 1, 1], [], []>} : vector<16x128xbf16>, vector<128x128xbf16>, vector<16x128xf32> -> vector<16x128xf32>
    %c0_15 = arith.constant 0 : index
    %c0_16 = arith.constant 0 : index
    %19 = vector.load %arg7[%c0_15, %c0_16] : memref<1x128xf32, #tpu.memory_space<vmem>>, vector<1x128xf32>
    %20 = vector.broadcast %19 : vector<1x128xf32> to vector<16x128xf32>
    %21 = arith.addf %18, %20 : vector<16x128xf32>
    %22 = tpu.iota {dimensions = array<i32: 1>} : vector<16x128xi32>
    %c10_i32 = arith.constant 10 : i32
    %23 = vector.broadcast %c10_i32 : i32 to vector<16x128xi32>
    %24 = arith.cmpi slt, %22, %23 : vector<16x128xi32>
    %cst_17 = arith.constant -1.000000e+30 : f32
    %25 = vector.broadcast %cst_17 : f32 to vector<16x128xf32>
    %26 = arith.select %24, %21, %25 : vector<16x128xi1>, vector<16x128xf32>
    %cst_18 = arith.constant dense<0xFF800000> : vector<16xf32>
    %27 = vector.multi_reduction <maximumf>, %26, %cst_18 [1] : vector<16x128xf32> to vector<16xf32>
    %28 = vector.shape_cast %27 : vector<16xf32> to vector<16x1xf32>
    %29 = vector.broadcast %28 : vector<16x1xf32> to vector<16x128xf32>
    %30 = arith.subf %26, %29 : vector<16x128xf32>
    %31 = math.exp %30 : vector<16x128xf32>
    %cst_19 = arith.constant dense<0.000000e+00> : vector<16xf32>
    %32 = vector.multi_reduction <add>, %31, %cst_19 [1] : vector<16x128xf32> to vector<16xf32>
    %33 = vector.shape_cast %32 : vector<16xf32> to vector<16x1xf32>
    %34 = math.log %33 : vector<16x1xf32>
    %35 = arith.addf %28, %34 : vector<16x1xf32>
    %36 = vector.broadcast %35 : vector<16x1xf32> to vector<16x128xf32>
    %37 = arith.subf %26, %36 : vector<16x128xf32>
    %c0_20 = arith.constant 0 : index
    %c0_21 = arith.constant 0 : index
    %38 = vector.load %arg8[%c0_20, %c0_21] : memref<16x128xf32, #tpu.memory_space<vmem>>, vector<16x128xf32>
    tpu.vector_store %arg8[%c0_20, %c0_21], %37 {strides = array<i32>} : memref<16x128xf32, #tpu.memory_space<vmem>>, vector<16x128xf32>,
    return
  }
  func.func @transform_0(%arg0: i32) -> (i32, i32) {
    %c0_i32 = arith.constant 0 : i32
    %c0_i32_0 = arith.constant 0 : i32
    return %arg0, %c0_i32 : i32, i32
  }
  func.func @transform_1(%arg0: i32) -> (i32, i32) {
    %c0_i32 = arith.constant 0 : i32
    %c0_i32_0 = arith.constant 0 : i32
    %c0_i32_1 = arith.constant 0 : i32
    return %c0_i32, %c0_i32_0 : i32, i32
  }
  func.func @transform_2(%arg0: i32) -> (i32, i32) {
    %c0_i32 = arith.constant 0 : i32
    %c0_i32_0 = arith.constant 0 : i32
    %c0_i32_1 = arith.constant 0 : i32
    return %c0_i32, %c0_i32_0 : i32, i32
  }
  func.func @transform_3(%arg0: i32) -> (i32, i32) {
    %c0_i32 = arith.constant 0 : i32
    %c0_i32_0 = arith.constant 0 : i32
    %c0_i32_1 = arith.constant 0 : i32
    return %c0_i32, %c0_i32_0 : i32, i32
  }
  func.func @transform_4(%arg0: i32) -> (i32, i32) {
    %c0_i32 = arith.constant 0 : i32
    %c0_i32_0 = arith.constant 0 : i32
    %c0_i32_1 = arith.constant 0 : i32
    return %c0_i32, %c0_i32_0 : i32, i32
  }
  func.func @transform_5(%arg0: i32) -> (i32, i32) {
    %c0_i32 = arith.constant 0 : i32
    %c0_i32_0 = arith.constant 0 : i32
    %c0_i32_1 = arith.constant 0 : i32
    return %c0_i32, %c0_i32_0 : i32, i32
  }
  func.func @transform_6(%arg0: i32) -> (i32, i32) {
    %c0_i32 = arith.constant 0 : i32
    %c0_i32_0 = arith.constant 0 : i32
    %c0_i32_1 = arith.constant 0 : i32
    return %c0_i32, %c0_i32_0 : i32, i32
  }
  func.func @transform_7(%arg0: i32) -> (i32, i32) {
    %c0_i32 = arith.constant 0 : i32
    %c0_i32_0 = arith.constant 0 : i32
    return %arg0, %c0_i32 : i32, i32
  }
}

</mosaic_0001>

<bundles_post_ra>
// kernel: net_forward.3
= control target key start
LH: loop header
LB: loop body
LE: loop exit
PB: predicated region body
PF: predicated region fallthrough
CT: control target
= control target key end

     0   :  { %s1202_s12 = smov 0   ;;  %s1675_s0 = inlined_call_operand.vmem [shape: bf16[512,100], index: 0, kind: input, shape index: {}]   ;;  %s1676_s1 = inlined_call_operand.vmem [shape: bf16[100,128], index: 1, kind: input, shape index: {}]   ;;  %s1677_s2 = inlined_call_operand.vmem [shape: f32[1,128], index: 2, kind: input, shape index: {}]   ;;  %s1678_s3 = inlined_call_operand.vmem [shape: f32[512,8], index: 3, kind: output, shape index: {}]  }
   0x1 LB: > { %s1001_s13 = sadd.s32 4294967295, %s1177_s12   ;;  %p1005_p0 = scmp.ge.s32.totalorder %s1177_s12, 1  ;;  %s1177_s12 = sphi %s1202_s12, %s13_s12  }
   0x2   : > { %p138_p1 = scmp.lt.s32.totalorder %s1177_s12, 3 }
   0x4   : > { %p139_p2 = pnand %p1005_p0, %p138_p1 }
   0x5   : > { %v1148_v0 = vld [vmem:[%s1676_s1] sm:$0xff] (!%p139_p2)   ;;  %v1149_v1 = vld [vmem:[%s1676_s1 + $0x8] sm:$0xff] (!%p139_p2)   ;;  %s1006_s18 = sshll.u32 (!%p139_p2), %s1001_s13, 5  ;;  %v1150_v2 = vld [vmem:[%s1676_s1 + $0x10] sm:$0xff] (!%p139_p2)   ;;  %vm339_vm0 = vcmask (!%p139_p2), 818176   ;;  %vm388_vm1 = vcmask (!%p139_p2), 1041408  }
   0x6   : > { %142 = sbr.rel (%p139_p2) target bundleno = 559 (0x22f), region = 32  ;;  %1075 = vmatprep.subr.bf16.mxu0 (!%p139_p2), %v1148_v0  ;;  %1121 = vmatprep.subr.bf16.mxu1 (!%p139_p2), %v1148_v0  ;;  %p163_p3 = scmp.lt.s32.totalorder (!%p139_p2), %s1006_s18, 63  ;;  %v1151_v3 = vld [vmem:[%s1676_s1 + $0x18] sm:$0xff] (!%p139_p2)   ;;  %v1152_v6 = vld [vmem:[%s1676_s1 + $0x20] sm:$0xff] (!%p139_p2)   ;;  %v1153_v7 = vld [vmem:[%s1676_s1 + $0x28] sm:$0xff] (!%p139_p2)   ;;  %vm912_vm2 = vcmask (!%p139_p2), 64512  }
   0x7   : > { %1076 = vmatpush3.bf16.msra.mxu0 (!%p139_p2), %v1148_v0  ;;  %1128 = vmatpush3.bf16.msra.mxu1 (!%p139_p2), %v1148_v0  ;;  %v1154_v8 = vld [vmem:[%s1676_s1 + $0x30] ss:$0 sps:$4 sm:$0x33] (!%p139_p2)   ;;  %s1179_s6 = smov (!%p139_p2), 32   ;;  %s1180_s7 = smov (!%p139_p2), 64  }
   0x8   : > { %1077 = vmatprep.subr.bf16.mxu0 (!%p139_p2), %v1149_v1  ;;  %1122 = vmatprep.subr.bf16.mxu1 (!%p139_p2), %v1149_v1  ;;  %v390_v9 = vsel (!%p139_p2), %vm388_vm1, %v1154_v8, 0  ;;  %s1181_s8 = smov (!%p139_p2), 96  }
   0xb   : > { %1078 = vmatpush3.bf16.msra.mxu0 (!%p139_p2), %v1149_v1  ;;  %1129 = vmatpush3.bf16.msra.mxu1 (!%p139_p2), %v1149_v1 }
   0xc   : > { %1079 = vmatprep.subr.bf16.mxu0 (!%p139_p2), %v1150_v2  ;;  %1123 = vmatprep.subr.bf16.mxu1 (!%p139_p2), %v1150_v2 }
   0xd   : > { %s1680_s18 = smov (!%p163_p3, %s1006_s18), 63 }
   0xe   : > { %s1007_s21 = sshll.u32 %s1680_s18, 2  ;;  %s1009_s11 = sshll.u32 %s1680_s18, 3 }
   0xf   : > { %s1228_s26 = scalar_lea.vmem %s1675_s0, %s1007_s21  ;;  %1080 = vmatpush3.bf16.msra.mxu0 %v1150_v2  ;;  %1130 = vmatpush3.bf16.msra.mxu1 %v1150_v2  ;;  %v1467_v2 = vld [vmem:[%s1677_s2] ss:$0 sm:$0xff]  ;;  %s1479_s15 = scalar_lea.vmem %s1678_s3, %s1009_s11 }
  0x10   : > { %v1155_v4 = vld [vmem:[%s1228_s26] sm:$0xff]   ;;  %1081 = vmatprep.subr.bf16.mxu0 %v1151_v3  ;;  %1124 = vmatprep.subr.bf16.mxu1 %v1151_v3  ;;  %v1157_v10 = vld [vmem:[%s1228_s26 + $0x8] sm:$0xff]   ;;  %v1159_v12 = vld [vmem:[%s1228_s26 + $0x10] sm:$0xff]  }
  0x11   : > { %v1156_v5 = vld [vmem:[%s1228_s26 + $0x40] sm:$0xff]   ;;  %1089 = vmatprep.mubr.msk.bf16.mxu0 %vm339_vm0, %v1155_v4  ;;  %v1158_v11 = vld [vmem:[%s1228_s26 + $0x48] sm:$0xff]   ;;  %v1161_v13 = vld [vmem:[%s1228_s26 + $0x50] sm:$0xff]  }
  0x12   : > { %1105 = vmatprep.mubr.msk.bf16.mxu1 %vm339_vm0, %v1156_v5  ;;  %v1160_v14 = vld [vmem:[%s1228_s26 + $0x18] sm:$0xff]   ;;  %v1163_v16 = vld [vmem:[%s1228_s26 + $0x20] sm:$0xff]   ;;  %v1164_v18 = vld [vmem:[%s1228_s26 + $0x28] sm:$0xff]  }
  0x13   : > { %1082 = vmatpush3.bf16.msra.mxu0 %v1151_v3  ;;  %1131 = vmatpush3.bf16.msra.mxu1 %v1151_v3  ;;  %v1162_v15 = vld [vmem:[%s1228_s26 + $0x58] sm:$0xff]   ;;  %v1165_v17 = vld [vmem:[%s1228_s26 + $0x60] sm:$0xff]   ;;  %v1166_v19 = vld [vmem:[%s1228_s26 + $0x68] sm:$0xff]  }
  0x14   : > { %1083 = vmatprep.subr.bf16.mxu0 %v1152_v6  ;;  %1125 = vmatprep.subr.bf16.mxu1 %v1152_v6  ;;  %v1167_v20 = vld [vmem:[%s1228_s26 + $0x30] sm:$0xff]   ;;  %v1168_v22 = vld [vmem:[%s1228_s26 + $0x38] sm:$0xff]  }
  0x15   : > { %v1169_v21 = vld [vmem:[%s1228_s26 + $0x70] sm:$0xff]   ;;  %v1170_v23 = vld [vmem:[%s1228_s26 + $0x78] sm:$0xff]  }
  0x17   : > { %1084 = vmatpush3.bf16.msra.mxu0 %v1152_v6  ;;  %1132 = vmatpush3.bf16.msra.mxu1 %v1152_v6 }
  0x18   : > { %1085 = vmatprep.subr.bf16.mxu0 %v1153_v7  ;;  %1126 = vmatprep.subr.bf16.mxu1 %v1153_v7 }
  0x1b   : > { %1086 = vmatpush3.bf16.msra.mxu0 %v1153_v7  ;;  %1133 = vmatpush3.bf16.msra.mxu1 %v1153_v7 }
  0x1c   : > { %1135 = vmatprep.subr.msk.bf16.mxu0 %vm388_vm1, %v1154_v8  ;;  %1136 = vmatprep.subr.msk.bf16.mxu1 %vm388_vm1, %v1154_v8 }
  0x1f   : > { %1088 = vmatpush3.bf16.msra.mxu0 %v390_v9  ;;  %1134 = vmatpush3.bf16.msra.mxu1 %v390_v9 }
  0x22   : > { %1090 = vmatmul.mubr.msk.bf16.vlgmr.msra.gmra.mrb[0].mxu0 %vm339_vm0, %v1157_v10  ;;  %1106 = vmatmul.mubr.msk.bf16.vlgmr.msra.gmra.mrb[0].mxu1 %vm339_vm0, %v1158_v11 }
  0x23   : > { %1093 = vmatprep.mubr.msk.bf16.mxu0 %vm339_vm0, %v1159_v12  ;;  %1109 = vmatprep.mubr.msk.bf16.mxu1 %vm339_vm0, %v1161_v13 }
  0x2a   : > { %1094 = vmatmul.mubr.msk.bf16.gmra.mrb[4].mxu0 %vm339_vm0, %v1160_v14  ;;  %1110 = vmatmul.mubr.msk.bf16.gmra.mrb[4].mxu1 %vm339_vm0, %v1162_v15 }
  0x2b   : > { %1097 = vmatprep.mubr.msk.bf16.mxu0 %vm339_vm0, %v1163_v16  ;;  %1113 = vmatprep.mubr.msk.bf16.mxu1 %vm339_vm0, %v1165_v17 }
  0x32   : > { %1098 = vmatmul.mubr.msk.bf16.gmra.mrb[8].mxu0 %vm339_vm0, %v1164_v18  ;;  %1114 = vmatmul.mubr.msk.bf16.gmra.mrb[8].mxu1 %vm339_vm0, %v1166_v19 }
  0x33   : > { %1101 = vmatprep.mubr.msk.bf16.mxu0 %vm339_vm0, %v1167_v20  ;;  %1117 = vmatprep.mubr.msk.bf16.mxu1 %vm339_vm0, %v1169_v21 }
  0x3a   : > { %1102 = vmatmul.mubr.msk.bf16.gmra.mrb[12].mxu0 %vm339_vm0, %v1168_v22  ;;  %1118 = vmatmul.mubr.msk.bf16.gmra.mrb[12].mxu1 %vm339_vm0, %v1170_v23 }
  0xf5   : > { %v1271_v24 = vpop.f32.mrb[0].mxu0  ;;  %v1273_v25 = vpop.f32.mrb[0].mxu1 }
  0xf6   : > { %589 = vrot.lane.b32.xlu0 %v1273_v25, %s1179_s6  ;;  %v1277_v26 = vpop.f32.mrb[1].mxu1  ;;  %557 = vrot.lane.b32.xlu1 %v1271_v24, %s1179_s6  ;;  %v1281_v27 = vpop.f32.mrb[1].mxu0 }
  0xf7   : > { %v1283_v28 = vpop.f32.mrb[2].mxu0  ;;  %v1285_v29 = vpop.f32.mrb[2].mxu1 }
  0xf8   : > { %v1287_v30 = vpop.f32.mrb[3].mxu0  ;;  %v1289_v31 = vpop.f32.mrb[3].mxu1 }
  0xfa   : > { %653 = vrot.lane.b32.xlu0 %v1271_v24, %s1180_s7  ;;  %559 = vrot.lane.b32.xlu1 %v1283_v28, %s1179_s6 }
  0xfd   : > { %v1295_v32 = vpop.f32.mrb[4].mxu0  ;;  %v1297_v33 = vpop.f32.mrb[4].mxu1 }
  0xfe   : > { %685 = vrot.lane.b32.xlu0 %v1273_v25, %s1180_s7  ;;  %591 = vrot.lane.b32.xlu1 %v1285_v29, %s1179_s6  ;;  %v1303_v34 = vpop.f32.mrb[5].mxu0  ;;  %v1305_v35 = vpop.f32.mrb[5].mxu1 }
  0xff   : > { %v1307_v36 = vpop.f32.mrb[6].mxu0  ;;  %v1309_v37 = vpop.f32.mrb[6].mxu1 }
 0x100   : > { %v1311_v38 = vpop.f32.mrb[7].mxu0  ;;  %v1313_v39 = vpop.f32.mrb[7].mxu1 }
 0x102   : > { %717 = vrot.lane.b32.xlu0 %v1271_v24, %s1181_s8  ;;  %655 = vrot.lane.b32.xlu1 %v1283_v28, %s1180_s7 }
 0x105   : > { %v1319_v40 = vpop.f32.mrb[8].mxu0  ;;  %v1321_v41 = vpop.f32.mrb[8].mxu1 }
 0x106   : > { %749 = vrot.lane.b32.xlu0 %v1273_v25, %s1181_s8  ;;  %687 = vrot.lane.b32.xlu1 %v1285_v29, %s1180_s7  ;;  %v1327_v42 = vpop.f32.mrb[9].mxu0  ;;  %v1329_v43 = vpop.f32.mrb[9].mxu1 }
 0x107   : > { %v1331_v44 = vpop.f32.mrb[10].mxu0  ;;  %v1333_v45 = vpop.f32.mrb[10].mxu1 }
 0x108   : > { %v1335_v46 = vpop.f32.mrb[11].mxu0  ;;  %v1337_v47 = vpop.f32.mrb[11].mxu1 }
 0x10a   : > { %553 = vrot.lane.b32.xlu0 %v1281_v27, %s1179_s6  ;;  %719 = vrot.lane.b32.xlu1 %v1283_v28, %s1181_s8 }
 0x10d   : > { %v1343_v48 = vpop.f32.mrb[12].mxu0  ;;  %v1345_v49 = vpop.f32.mrb[12].mxu1 }
 0x10e   : > { %585 = vrot.lane.b32.xlu0 %v1277_v26, %s1179_s6  ;;  %751 = vrot.lane.b32.xlu1 %v1285_v29, %s1181_s8  ;;  %v1351_v50 = vpop.f32.mrb[13].mxu0  ;;  %v1353_v51 = vpop.f32.mrb[13].mxu1 }
 0x10f   : > { %v1355_v52 = vpop.f32.mrb[14].mxu0  ;;  %v1357_v53 = vpop.f32.mrb[14].mxu1 }
 0x110   : > { %v1359_v54 = vpop.f32.mrb[15].mxu0  ;;  %v1361_v55 = vpop.f32.mrb[15].mxu1 }
 0x112   : > { %649 = vrot.lane.b32.xlu0 %v1281_v27, %s1180_s7  ;;  %587 = vrot.lane.b32.xlu1 %v1289_v31, %s1179_s6 }
 0x116   : > { %681 = vrot.lane.b32.xlu0 %v1277_v26, %s1180_s7  ;;  %651 = vrot.lane.b32.xlu1 %v1287_v30, %s1180_s7 }
 0x11a   : > { %713 = vrot.lane.b32.xlu0 %v1281_v27, %s1181_s8  ;;  %683 = vrot.lane.b32.xlu1 %v1289_v31, %s1180_s7 }
 0x11e   : > { %745 = vrot.lane.b32.xlu0 %v1277_v26, %s1181_s8  ;;  %715 = vrot.lane.b32.xlu1 %v1287_v30, %s1181_s8 }
 0x122   : > { %747 = vrot.lane.b32.xlu1 %v1289_v31, %s1181_s8  ;;  %555 = vrot.lane.b32.xlu0 %v1287_v30, %s1179_s6 }
 0x126   : > { %565 = vrot.lane.b32.xlu0 %v1295_v32, %s1179_s6  ;;  %567 = vrot.lane.b32.xlu1 %v1307_v36, %s1179_s6 }
 0x12a   : > { %597 = vrot.lane.b32.xlu0 %v1297_v33, %s1179_s6  ;;  %599 = vrot.lane.b32.xlu1 %v1309_v37, %s1179_s6 }
 0x12e   : > { %661 = vrot.lane.b32.xlu0 %v1295_v32, %s1180_s7  ;;  %663 = vrot.lane.b32.xlu1 %v1307_v36, %s1180_s7 }
 0x132   : > { %693 = vrot.lane.b32.xlu0 %v1297_v33, %s1180_s7  ;;  %695 = vrot.lane.b32.xlu1 %v1309_v37, %s1180_s7 }
 0x136   : > { %725 = vrot.lane.b32.xlu0 %v1295_v32, %s1181_s8  ;;  %727 = vrot.lane.b32.xlu1 %v1307_v36, %s1181_s8 }
 0x13a   : > { %757 = vrot.lane.b32.xlu0 %v1297_v33, %s1181_s8  ;;  %759 = vrot.lane.b32.xlu1 %v1309_v37, %s1181_s8 }
 0x13e   : > { %561 = vrot.lane.b32.xlu0 %v1303_v34, %s1179_s6  ;;  %563 = vrot.lane.b32.xlu1 %v1311_v38, %s1179_s6 }
 0x142   : > { %593 = vrot.lane.b32.xlu0 %v1305_v35, %s1179_s6  ;;  %595 = vrot.lane.b32.xlu1 %v1313_v39, %s1179_s6 }
 0x146   : > { %657 = vrot.lane.b32.xlu0 %v1303_v34, %s1180_s7  ;;  %659 = vrot.lane.b32.xlu1 %v1311_v38, %s1180_s7 }
 0x14a   : > { %689 = vrot.lane.b32.xlu0 %v1305_v35, %s1180_s7  ;;  %691 = vrot.lane.b32.xlu1 %v1313_v39, %s1180_s7 }
 0x14e   : > { %721 = vrot.lane.b32.xlu0 %v1303_v34, %s1181_s8  ;;  %723 = vrot.lane.b32.xlu1 %v1311_v38, %s1181_s8 }
 0x152   : > { %753 = vrot.lane.b32.xlu0 %v1305_v35, %s1181_s8  ;;  %755 = vrot.lane.b32.xlu1 %v1313_v39, %s1181_s8 }
 0x156   : > { %573 = vrot.lane.b32.xlu0 %v1319_v40, %s1179_s6  ;;  %575 = vrot.lane.b32.xlu1 %v1331_v44, %s1179_s6 }
 0x15a   : > { %605 = vrot.lane.b32.xlu0 %v1321_v41, %s1179_s6  ;;  %607 = vrot.lane.b32.xlu1 %v1333_v45, %s1179_s6 }
 0x15e   : > { %669 = vrot.lane.b32.xlu0 %v1319_v40, %s1180_s7  ;;  %671 = vrot.lane.b32.xlu1 %v1331_v44, %s1180_s7 }
 0x162   : > { %701 = vrot.lane.b32.xlu0 %v1321_v41, %s1180_s7  ;;  %703 = vrot.lane.b32.xlu1 %v1333_v45, %s1180_s7 }
 0x166   : > { %733 = vrot.lane.b32.xlu0 %v1319_v40, %s1181_s8  ;;  %735 = vrot.lane.b32.xlu1 %v1331_v44, %s1181_s8 }
 0x168   : > { %v590_v56 = vpop.permute.xlu0 %589  ;;  %v558_v57 = vpop.permute.xlu1 %557 }
 0x169   : > { %v619_v0 = vmax.f32 %v1271_v24, %v558_v57  ;;  %v635_v6 = vmax.f32 %v1273_v25, %v590_v56 }
 0x16a   : > { %765 = vrot.lane.b32.xlu0 %v1321_v41, %s1181_s8  ;;  %767 = vrot.lane.b32.xlu1 %v1333_v45, %s1181_s8 }
 0x16c   : > { %v654_v58 = vpop.permute.xlu0 %653  ;;  %v560_v59 = vpop.permute.xlu1 %559 }
 0x16d   : > { %v620_v13 = vmax.f32 %v1283_v28, %v560_v59 }
 0x16e   : > { %569 = vrot.lane.b32.xlu0 %v1327_v42, %s1179_s6  ;;  %571 = vrot.lane.b32.xlu1 %v1335_v46, %s1179_s6 }
 0x170   : > { %v686_v60 = vpop.permute.xlu0 %685  ;;  %v592_v61 = vpop.permute.xlu1 %591 }
 0x171   : > { %v636_v20 = vmax.f32 %v1285_v29, %v592_v61 }
 0x172   : > { %601 = vrot.lane.b32.xlu0 %v1329_v43, %s1179_s6  ;;  %603 = vrot.lane.b32.xlu1 %v1337_v47, %s1179_s6 }
 0x174   : > { %v718_v62 = vpop.permute.xlu0 %717  ;;  %v656_v63 = vpop.permute.xlu1 %655 }
 0x175   : > { %v779_v1 = vmax.f32 %v654_v58, %v718_v62 }
 0x176   : > { %665 = vrot.lane.b32.xlu0 %v1327_v42, %s1180_s7  ;;  %667 = vrot.lane.b32.xlu1 %v1335_v46, %s1180_s7 }
 0x177   : > { %v811_v3 = vmax.f32 %v619_v0, %v779_v1 }
 0x178   : > { %v750_v4 = vpop.permute.xlu0 %749  ;;  %v688_v5 = vpop.permute.xlu1 %687 }
 0x179   : > { %v850_v7 = vadd.f32 %v1467_v2, %v811_v3  ;;  %v795_v8 = vmax.f32 %v686_v60, %v750_v4 }
 0x17a   : > { %697 = vrot.lane.b32.xlu0 %v1329_v43, %s1180_s7  ;;  %699 = vrot.lane.b32.xlu1 %v1337_v47, %s1180_s7 }
 0x17b   : > { %v882_v9 = vmax.f32 %v850_v7, 0.0  ;;  %v827_v10 = vmax.f32 %v635_v6, %v795_v8 }
 0x17c   : > { %v554_v11 = vpop.permute.xlu0 %553  ;;  %v720_v12 = vpop.permute.xlu1 %719 }
 0x17d   : > { %915 = vst.msk [vmem:[%s1479_s15 + $0x10] sm:$0xff] %vm912_vm2, %v882_v9  ;;  %v866_v14 = vadd.f32 %v1467_v2, %v827_v10  ;;  %v780_v15 = vmax.f32 %v656_v63, %v720_v12  ;;  %v617_v61 = vmax.f32 %v1281_v27, %v554_v11 }
 0x17e   : > { %729 = vrot.lane.b32.xlu0 %v1327_v42, %s1181_s8  ;;  %731 = vrot.lane.b32.xlu1 %v1335_v46, %s1181_s8 }
 0x17f   : > { %v898_v16 = vmax.f32 %v866_v14, 0.0  ;;  %v812_v17 = vmax.f32 %v620_v13, %v780_v15 }
 0x180   : > { %v586_v18 = vpop.permute.xlu0 %585  ;;  %v752_v19 = vpop.permute.xlu1 %751 }
 0x181   : > { %931 = vst.msk [vmem:[%s1479_s15 + $0x90] sm:$0xff] %vm912_vm2, %v898_v16  ;;  %v851_v21 = vadd.f32 %v1467_v2, %v812_v17  ;;  %v796_v22 = vmax.f32 %v688_v5, %v752_v19  ;;  %v633_v3 = vmax.f32 %v1277_v26, %v586_v18 }
 0x182   : > { %761 = vrot.lane.b32.xlu0 %v1329_v43, %s1181_s8  ;;  %763 = vrot.lane.b32.xlu1 %v1337_v47, %s1181_s8 }
 0x183   : > { %v883_v23 = vmax.f32 %v851_v21, 0.0  ;;  %v828_v24 = vmax.f32 %v636_v20, %v796_v22 }
 0x184   : > { %v650_v25 = vpop.permute.xlu0 %649  ;;  %v588_v28 = vpop.permute.xlu1 %587 }
 0x185   : > { %916 = vst.msk [vmem:[%s1479_s15 + $0x18] sm:$0xff] %vm912_vm2, %v883_v23  ;;  %v867_v29 = vadd.f32 %v1467_v2, %v828_v24  ;;  %v634_v7 = vmax.f32 %v1289_v31, %v588_v28 }
 0x186   : > { %581 = vrot.lane.b32.xlu0 %v1343_v48, %s1179_s6  ;;  %583 = vrot.lane.b32.xlu1 %v1355_v52, %s1179_s6 }
 0x187   : > { %v899_v56 = vmax.f32 %v867_v29, 0.0 }
 0x188   : > { %v682_v57 = vpop.permute.xlu0 %681  ;;  %v652_v58 = vpop.permute.xlu1 %651 }
 0x189   : > { %932 = vst.msk [vmem:[%s1479_s15 + $0x98] sm:$0xff] %vm912_vm2, %v899_v56 }
 0x18a   : > { %613 = vrot.lane.b32.xlu0 %v1345_v49, %s1179_s6  ;;  %615 = vrot.lane.b32.xlu1 %v1357_v53, %s1179_s6 }
 0x18c   : > { %v714_v59 = vpop.permute.xlu0 %713  ;;  %v684_v60 = vpop.permute.xlu1 %683 }
 0x18d   : > { %v777_v62 = vmax.f32 %v650_v25, %v714_v59 }
 0x18e   : > { %677 = vrot.lane.b32.xlu0 %v1343_v48, %s1180_s7  ;;  %679 = vrot.lane.b32.xlu1 %v1355_v52, %s1180_s7 }
 0x18f   : > { %v809_v63 = vmax.f32 %v617_v61, %v777_v62 }
 0x190   : > { %v746_v0 = vpop.permute.xlu0 %745  ;;  %v716_v1 = vpop.permute.xlu1 %715 }
 0x191   : > { %v848_v4 = vadd.f32 %v1467_v2, %v809_v63  ;;  %v793_v5 = vmax.f32 %v682_v57, %v746_v0  ;;  %v778_v10 = vmax.f32 %v652_v58, %v716_v1 }
 0x192   : > { %709 = vrot.lane.b32.xlu0 %v1345_v49, %s1180_s7  ;;  %711 = vrot.lane.b32.xlu1 %v1357_v53, %s1180_s7 }
 0x193   : > { %v880_v27 = vmax.f32 %v848_v4, 0.0  ;;  %v825_v6 = vmax.f32 %v633_v3, %v793_v5 }
 0x194   : > { %v748_v8 = vpop.permute.xlu1 %747  ;;  %v556_v9 = vpop.permute.xlu0 %555 }
 0x195   : > { %913 = vst.msk [vmem:[%s1479_s15] sm:$0xff] %vm912_vm2, %v880_v27  ;;  %v864_v26 = vadd.f32 %v1467_v2, %v825_v6  ;;  %v794_v11 = vmax.f32 %v684_v60, %v748_v8  ;;  %v618_v12 = vmax.f32 %v1287_v30, %v556_v9 }
 0x196   : > { %741 = vrot.lane.b32.xlu0 %v1343_v48, %s1181_s8  ;;  %743 = vrot.lane.b32.xlu1 %v1355_v52, %s1181_s8 }
 0x197   : > { %v896_v13 = vmax.f32 %v864_v26, 0.0  ;;  %v826_v31 = vmax.f32 %v634_v7, %v794_v11  ;;  %v810_v14 = vmax.f32 %v618_v12, %v778_v10 }
 0x198   : > { %v566_v15 = vpop.permute.xlu0 %565  ;;  %v568_v16 = vpop.permute.xlu1 %567 }
 0x199   : > { %929 = vst.msk [vmem:[%s1479_s15 + $0x80] sm:$0xff] %vm912_vm2, %v896_v13  ;;  %v865_v17 = vadd.f32 %v1467_v2, %v826_v31  ;;  %v849_v18 = vadd.f32 %v1467_v2, %v810_v14  ;;  %v623_v56 = vmax.f32 %v1295_v32, %v566_v15  ;;  %v624_v57 = vmax.f32 %v1307_v36, %v568_v16 }
 0x19a   : > { %577 = vrot.lane.b32.xlu0 %v1351_v50, %s1179_s6  ;;  %579 = vrot.lane.b32.xlu1 %v1359_v54, %s1179_s6 }
 0x19b   : > { %v897_v30 = vmax.f32 %v865_v17, 0.0  ;;  %v881_v19 = vmax.f32 %v849_v18, 0.0 }
 0x19c   : > { %v598_v20 = vpop.permute.xlu0 %597  ;;  %v600_v21 = vpop.permute.xlu1 %599 }
 0x19d   : > { %930 = vst.msk [vmem:[%s1479_s15 + $0x88] sm:$0xff] %vm912_vm2, %v897_v30  ;;  %914 = vst.msk [vmem:[%s1479_s15 + $0x8] sm:$0xff] %vm912_vm2, %v881_v19  ;;  %v639_v62 = vmax.f32 %v1297_v33, %v598_v20  ;;  %v640_v63 = vmax.f32 %v1309_v37, %v600_v21 }
 0x19e   : > { %609 = vrot.lane.b32.xlu0 %v1353_v51, %s1179_s6  ;;  %611 = vrot.lane.b32.xlu1 %v1361_v55, %s1179_s6 }
 0x1a0   : > { %v662_v22 = vpop.permute.xlu0 %661  ;;  %v664_v23 = vpop.permute.xlu1 %663 }
 0x1a2   : > { %673 = vrot.lane.b32.xlu0 %v1351_v50, %s1180_s7  ;;  %675 = vrot.lane.b32.xlu1 %v1359_v54, %s1180_s7 }
 0x1a4   : > { %v694_v24 = vpop.permute.xlu0 %693  ;;  %v696_v25 = vpop.permute.xlu1 %695 }
 0x1a6   : > { %705 = vrot.lane.b32.xlu0 %v1353_v51, %s1180_s7  ;;  %707 = vrot.lane.b32.xlu1 %v1361_v55, %s1180_s7 }
 0x1a8   : > { %v726_v28 = vpop.permute.xlu0 %725  ;;  %v728_v29 = vpop.permute.xlu1 %727 }
 0x1a9   : > { %v783_v58 = vmax.f32 %v662_v22, %v726_v28  ;;  %v784_v59 = vmax.f32 %v664_v23, %v728_v29 }
 0x1aa   : > { %737 = vrot.lane.b32.xlu0 %v1351_v50, %s1181_s8  ;;  %739 = vrot.lane.b32.xlu1 %v1359_v54, %s1181_s8 }
 0x1ab   : > { %v815_v60 = vmax.f32 %v623_v56, %v783_v58  ;;  %v816_v61 = vmax.f32 %v624_v57, %v784_v59 }
 0x1ac   : > { %v758_v0 = vpop.permute.xlu0 %757  ;;  %v760_v32 = vpop.permute.xlu1 %759 }
 0x1ad   : > { %v854_v36 = vadd.f32 %v1467_v2, %v815_v60  ;;  %v855_v1 = vadd.f32 %v1467_v2, %v816_v61  ;;  %v799_v3 = vmax.f32 %v694_v24, %v758_v0  ;;  %v800_v4 = vmax.f32 %v696_v25, %v760_v32 }
 0x1ae   : > { %769 = vrot.lane.b32.xlu0 %v1353_v51, %s1181_s8  ;;  %771 = vrot.lane.b32.xlu1 %v1361_v55, %s1181_s8 }
 0x1af   : > { %v886_v5 = vmax.f32 %v854_v36, 0.0  ;;  %v887_v33 = vmax.f32 %v855_v1, 0.0  ;;  %v831_v37 = vmax.f32 %v639_v62, %v799_v3  ;;  %v832_v27 = vmax.f32 %v640_v63, %v800_v4 }
 0x1b0   : > { %v562_v6 = vpop.permute.xlu0 %561  ;;  %v564_v7 = vpop.permute.xlu1 %563 }
 0x1b1   : > { %919 = vst.msk [vmem:[%s1479_s15 + $0x30] sm:$0xff] %vm912_vm2, %v886_v5  ;;  %920 = vst.msk [vmem:[%s1479_s15 + $0x38] sm:$0xff] %vm912_vm2, %v887_v33  ;;  %v870_v8 = vadd.f32 %v1467_v2, %v831_v37  ;;  %v871_v9 = vadd.f32 %v1467_v2, %v832_v27  ;;  %v621_v18 = vmax.f32 %v1303_v34, %v562_v6 }
 0x1b2   : > { %773 = vrot.lane.b32.xlu0 %v1345_v49, %s1181_s8  ;;  %775 = vrot.lane.b32.xlu1 %v1357_v53, %s1181_s8  ;;  %v622_v30 = vmax.f32 %v1311_v38, %v564_v7 }
 0x1b3   : > { %v902_v26 = vmax.f32 %v870_v8, 0.0  ;;  %v903_v10 = vmax.f32 %v871_v9, 0.0 }
 0x1b4   : > { %v594_v11 = vpop.permute.xlu0 %593  ;;  %v596_v12 = vpop.permute.xlu1 %595 }
 0x1b5   : > { %935 = vst.msk [vmem:[%s1479_s15 + $0xb0] sm:$0xff] %vm912_vm2, %v902_v26  ;;  %936 = vst.msk [vmem:[%s1479_s15 + $0xb8] sm:$0xff] %vm912_vm2, %v903_v10  ;;  %v637_v23 = vmax.f32 %v1305_v35, %v594_v11  ;;  %v638_v24 = vmax.f32 %v1313_v39, %v596_v12 }
 0x1b8   : > { %v658_v13 = vpop.permute.xlu0 %657  ;;  %v660_v31 = vpop.permute.xlu1 %659 }
 0x1bc   : > { %v690_v14 = vpop.permute.xlu0 %689  ;;  %v692_v15 = vpop.permute.xlu1 %691 }
 0x1c0   : > { %v722_v16 = vpop.permute.xlu0 %721  ;;  %v724_v17 = vpop.permute.xlu1 %723 }
 0x1c1   : > { %v781_v19 = vmax.f32 %v658_v13, %v722_v16  ;;  %v782_v20 = vmax.f32 %v660_v31, %v724_v17 }
 0x1c3   : > { %v813_v21 = vmax.f32 %v621_v18, %v781_v19  ;;  %v814_v22 = vmax.f32 %v622_v30, %v782_v20 }
 0x1c4   : > { %v754_v25 = vpop.permute.xlu0 %753  ;;  %v756_v28 = vpop.permute.xlu1 %755 }
 0x1c5   : > { %v852_v29 = vadd.f32 %v1467_v2, %v813_v21  ;;  %v853_v56 = vadd.f32 %v1467_v2, %v814_v22  ;;  %v797_v57 = vmax.f32 %v690_v14, %v754_v25  ;;  %v798_v34 = vmax.f32 %v692_v15, %v756_v28 }
 0x1c7   : > { %v884_v38 = vmax.f32 %v852_v29, 0.0  ;;  %v885_v58 = vmax.f32 %v853_v56, 0.0  ;;  %v829_v59 = vmax.f32 %v637_v23, %v797_v57  ;;  %v830_v60 = vmax.f32 %v638_v24, %v798_v34 }
 0x1c8   : > { %v574_v61 = vpop.permute.xlu0 %573  ;;  %v576_v62 = vpop.permute.xlu1 %575 }
 0x1c9   : > { %917 = vst.msk [vmem:[%s1479_s15 + $0x20] sm:$0xff] %vm912_vm2, %v884_v38  ;;  %918 = vst.msk [vmem:[%s1479_s15 + $0x28] sm:$0xff] %vm912_vm2, %v885_v58  ;;  %v868_v35 = vadd.f32 %v1467_v2, %v829_v59  ;;  %v869_v39 = vadd.f32 %v1467_v2, %v830_v60  ;;  %v627_v27 = vmax.f32 %v1319_v40, %v574_v61 }
 0x1ca   : > { %v628_v6 = vmax.f32 %v1331_v44, %v576_v62 }
 0x1cb   : > { %v900_v63 = vmax.f32 %v868_v35, 0.0  ;;  %v901_v0 = vmax.f32 %v869_v39, 0.0 }
 0x1cc   : > { %v606_v32 = vpop.permute.xlu0 %605  ;;  %v608_v36 = vpop.permute.xlu1 %607 }
 0x1cd   : > { %933 = vst.msk [vmem:[%s1479_s15 + $0xa0] sm:$0xff] %vm912_vm2, %v900_v63  ;;  %934 = vst.msk [vmem:[%s1479_s15 + $0xa8] sm:$0xff] %vm912_vm2, %v901_v0  ;;  %v643_v10 = vmax.f32 %v1321_v41, %v606_v32  ;;  %v644_v11 = vmax.f32 %v1333_v45, %v608_v36 }
 0x1d0   : > { %v670_v1 = vpop.permute.xlu0 %669  ;;  %v672_v3 = vpop.permute.xlu1 %671 }
 0x1d4   : > { %v702_v4 = vpop.permute.xlu0 %701  ;;  %v704_v5 = vpop.permute.xlu1 %703 }
 0x1d8   : > { %v734_v33 = vpop.permute.xlu0 %733  ;;  %v736_v37 = vpop.permute.xlu1 %735 }
 0x1d9   : > { %v787_v7 = vmax.f32 %v670_v1, %v734_v33  ;;  %v788_v8 = vmax.f32 %v672_v3, %v736_v37 }
 0x1db   : > { %v819_v9 = vmax.f32 %v627_v27, %v787_v7  ;;  %v820_v26 = vmax.f32 %v628_v6, %v788_v8 }
 0x1dc   : > { %v766_v12 = vpop.permute.xlu0 %765  ;;  %v768_v13 = vpop.permute.xlu1 %767 }
 0x1dd   : > { %v858_v31 = vadd.f32 %v1467_v2, %v819_v9  ;;  %v859_v14 = vadd.f32 %v1467_v2, %v820_v26  ;;  %v803_v15 = vmax.f32 %v702_v4, %v766_v12  ;;  %v804_v40 = vmax.f32 %v704_v5, %v768_v13 }
 0x1df   : > { %v890_v44 = vmax.f32 %v858_v31, 0.0  ;;  %v891_v16 = vmax.f32 %v859_v14, 0.0  ;;  %v835_v17 = vmax.f32 %v643_v10, %v803_v15  ;;  %v836_v18 = vmax.f32 %v644_v11, %v804_v40 }
 0x1e0   : > { %v570_v30 = vpop.permute.xlu0 %569  ;;  %v572_v19 = vpop.permute.xlu1 %571 }
 0x1e1   : > { %923 = vst.msk [vmem:[%s1479_s15 + $0x50] sm:$0xff] %vm912_vm2, %v890_v44  ;;  %924 = vst.msk [vmem:[%s1479_s15 + $0x58] sm:$0xff] %vm912_vm2, %v891_v16  ;;  %v874_v41 = vadd.f32 %v1467_v2, %v835_v17  ;;  %v875_v45 = vadd.f32 %v1467_v2, %v836_v18  ;;  %v625_v34 = vmax.f32 %v1327_v42, %v570_v30 }
 0x1e2   : > { %v626_v38 = vmax.f32 %v1335_v46, %v572_v19 }
 0x1e3   : > { %v906_v20 = vmax.f32 %v874_v41, 0.0  ;;  %v907_v21 = vmax.f32 %v875_v45, 0.0 }
 0x1e4   : > { %v602_v22 = vpop.permute.xlu0 %601  ;;  %v604_v23 = vpop.permute.xlu1 %603 }
 0x1e5   : > { %939 = vst.msk [vmem:[%s1479_s15 + $0xd0] sm:$0xff] %vm912_vm2, %v906_v20  ;;  %940 = vst.msk [vmem:[%s1479_s15 + $0xd8] sm:$0xff] %vm912_vm2, %v907_v21  ;;  %v641_v62 = vmax.f32 %v1329_v43, %v602_v22  ;;  %v642_v35 = vmax.f32 %v1337_v47, %v604_v23 }
 0x1e8   : > { %v666_v24 = vpop.permute.xlu0 %665  ;;  %v668_v25 = vpop.permute.xlu1 %667 }
 0x1ec   : > { %v698_v28 = vpop.permute.xlu0 %697  ;;  %v700_v29 = vpop.permute.xlu1 %699 }
 0x1f0   : > { %v730_v56 = vpop.permute.xlu0 %729  ;;  %v732_v57 = vpop.permute.xlu1 %731 }
 0x1f1   : > { %v785_v58 = vmax.f32 %v666_v24, %v730_v56  ;;  %v786_v59 = vmax.f32 %v668_v25, %v732_v57 }
 0x1f3   : > { %v817_v60 = vmax.f32 %v625_v34, %v785_v58  ;;  %v818_v61 = vmax.f32 %v626_v38, %v786_v59 }
 0x1f4   : > { %v762_v39 = vpop.permute.xlu0 %761  ;;  %v764_v63 = vpop.permute.xlu1 %763 }
 0x1f5   : > { %v856_v0 = vadd.f32 %v1467_v2, %v817_v60  ;;  %v857_v32 = vadd.f32 %v1467_v2, %v818_v61  ;;  %v801_v36 = vmax.f32 %v698_v28, %v762_v39  ;;  %v802_v42 = vmax.f32 %v700_v29, %v764_v63 }
 0x1f7   : > { %v888_v46 = vmax.f32 %v856_v0, 0.0  ;;  %v889_v1 = vmax.f32 %v857_v32, 0.0  ;;  %v833_v3 = vmax.f32 %v641_v62, %v801_v36  ;;  %v834_v4 = vmax.f32 %v642_v35, %v802_v42 }
 0x1f8   : > { %v582_v5 = vpop.permute.xlu0 %581  ;;  %v584_v33 = vpop.permute.xlu1 %583 }
 0x1f9   : > { %921 = vst.msk [vmem:[%s1479_s15 + $0x40] sm:$0xff] %vm912_vm2, %v888_v46  ;;  %922 = vst.msk [vmem:[%s1479_s15 + $0x48] sm:$0xff] %vm912_vm2, %v889_v1  ;;  %v872_v43 = vadd.f32 %v1467_v2, %v833_v3  ;;  %v873_v47 = vadd.f32 %v1467_v2, %v834_v4  ;;  %v631_v13 = vmax.f32 %v1343_v48, %v582_v5 }
 0x1fa   : > { %v632_v31 = vmax.f32 %v1355_v52, %v584_v33 }
 0x1fb   : > { %v904_v37 = vmax.f32 %v872_v43, 0.0  ;;  %v905_v27 = vmax.f32 %v873_v47, 0.0 }
 0x1fc   : > { %v1630_v6 = vpop.permute.xlu0 %613  ;;  %v1632_v7 = vpop.permute.xlu1 %615 }
 0x1fd   : > { %937 = vst.msk [vmem:[%s1479_s15 + $0xc0] sm:$0xff] %vm912_vm2, %v904_v37  ;;  %938 = vst.msk [vmem:[%s1479_s15 + $0xc8] sm:$0xff] %vm912_vm2, %v905_v27 }
 0x200   : > { %v678_v8 = vpop.permute.xlu0 %677  ;;  %v680_v9 = vpop.permute.xlu1 %679 }
 0x204   : > { %v710_v26 = vpop.permute.xlu0 %709  ;;  %v712_v10 = vpop.permute.xlu1 %711 }
 0x208   : > { %v742_v11 = vpop.permute.xlu0 %741  ;;  %v744_v12 = vpop.permute.xlu1 %743 }
 0x209   : > { %v791_v14 = vmax.f32 %v678_v8, %v742_v11  ;;  %v792_v15 = vmax.f32 %v680_v9, %v744_v12 }
 0x20b   : > { %v823_v40 = vmax.f32 %v631_v13, %v791_v14  ;;  %v824_v44 = vmax.f32 %v632_v31, %v792_v15 }
 0x20c   : > { %v578_v16 = vpop.permute.xlu0 %577  ;;  %v580_v17 = vpop.permute.xlu1 %579 }
 0x20d   : > { %v862_v18 = vadd.f32 %v1467_v2, %v823_v40  ;;  %v863_v30 = vadd.f32 %v1467_v2, %v824_v44  ;;  %v629_v25 = vmax.f32 %v1351_v50, %v578_v16  ;;  %v630_v28 = vmax.f32 %v1359_v54, %v580_v17 }
 0x20f   : > { %v894_v19 = vmax.f32 %v862_v18, 0.0  ;;  %v895_v41 = vmax.f32 %v863_v30, 0.0 }
 0x210   : > { %v610_v45 = vpop.permute.xlu0 %609  ;;  %v612_v20 = vpop.permute.xlu1 %611 }
 0x211   : > { %927 = vst.msk [vmem:[%s1479_s15 + $0x70] sm:$0xff] %vm912_vm2, %v894_v19  ;;  %928 = vst.msk [vmem:[%s1479_s15 + $0x78] sm:$0xff] %vm912_vm2, %v895_v41  ;;  %v645_v38 = vmax.f32 %v1353_v51, %v610_v45  ;;  %v646_v58 = vmax.f32 %v1361_v55, %v612_v20  ;;  %v647_v51 = vmax.f32 %v1345_v49, %v1630_v6 }
 0x212   : > { %v648_v55 = vmax.f32 %v1357_v53, %v1632_v7 }
 0x214   : > { %v674_v48 = vpop.permute.xlu0 %673  ;;  %v676_v52 = vpop.permute.xlu1 %675 }
 0x218   : > { %v706_v21 = vpop.permute.xlu0 %705  ;;  %v708_v22 = vpop.permute.xlu1 %707 }
 0x21c   : > { %v738_v23 = vpop.permute.xlu0 %737  ;;  %v740_v24 = vpop.permute.xlu1 %739 }
 0x21d   : > { %v789_v29 = vmax.f32 %v674_v48, %v738_v23  ;;  %v790_v56 = vmax.f32 %v676_v52, %v740_v24 }
 0x21f   : > { %v821_v57 = vmax.f32 %v629_v25, %v789_v29  ;;  %v822_v34 = vmax.f32 %v630_v28, %v790_v56 }
 0x220   : > { %v770_v59 = vpop.permute.xlu0 %769  ;;  %v772_v60 = vpop.permute.xlu1 %771 }
 0x221   : > { %v860_v61 = vadd.f32 %v1467_v2, %v821_v57  ;;  %v861_v62 = vadd.f32 %v1467_v2, %v822_v34  ;;  %v805_v35 = vmax.f32 %v706_v21, %v770_v59  ;;  %v806_v50 = vmax.f32 %v708_v22, %v772_v60 }
 0x223   : > { %v892_v39 = vmax.f32 %v860_v61, 0.0  ;;  %v893_v54 = vmax.f32 %v861_v62, 0.0  ;;  %v837_v63 = vmax.f32 %v645_v38, %v805_v35  ;;  %v838_v0 = vmax.f32 %v646_v58, %v806_v50 }
 0x224   : > { %v774_v32 = vpop.permute.xlu0 %773  ;;  %v776_v36 = vpop.permute.xlu1 %775 }
 0x225   : > { %925 = vst.msk [vmem:[%s1479_s15 + $0x60] sm:$0xff] %vm912_vm2, %v892_v39  ;;  %926 = vst.msk [vmem:[%s1479_s15 + $0x68] sm:$0xff] %vm912_vm2, %v893_v54  ;;  %v876_v42 = vadd.f32 %v1467_v2, %v837_v63  ;;  %v877_v46 = vadd.f32 %v1467_v2, %v838_v0  ;;  %v807_v1 = vmax.f32 %v710_v26, %v774_v32 }
 0x226   : > { %v808_v3 = vmax.f32 %v712_v10, %v776_v36 }
 0x227   : > { %v908_v4 = vmax.f32 %v876_v42, 0.0  ;;  %v909_v5 = vmax.f32 %v877_v46, 0.0  ;;  %v839_v49 = vmax.f32 %v647_v51, %v807_v1 }
 0x228   : > { %v840_v33 = vmax.f32 %v648_v55, %v808_v3 }
 0x229   : > { %941 = vst.msk [vmem:[%s1479_s15 + $0xe0] sm:$0xff] %vm912_vm2, %v908_v4  ;;  %942 = vst.msk [vmem:[%s1479_s15 + $0xe8] sm:$0xff] %vm912_vm2, %v909_v5  ;;  %v878_v53 = vadd.f32 %v1467_v2, %v839_v49 }
 0x22a   : > { %v879_v43 = vadd.f32 %v1467_v2, %v840_v33 }
 0x22b   : > { %v910_v47 = vmax.f32 %v878_v53, 0.0 }
 0x22c   : > { %v911_v37 = vmax.f32 %v879_v43, 0.0 }
 0x22d   : > { %943 = vst.msk [vmem:[%s1479_s15 + $0xf0] sm:$0xff] %vm912_vm2, %v910_v47 }
 0x22e   : > { %944 = vst.msk [vmem:[%s1479_s15 + $0xf8] sm:$0xff] %vm912_vm2, %v911_v37 }
 0x22f PF: > { %s13_s12 = sadd.s32 1, %s1177_s12  }
 0x230   : > { %p10_p4 = scmp.ge.s32.totalorder %s13_s12, 4  }
 0x232   :  { %12 = sbr.rel (!%p10_p4) target bundleno = 1 (0x1), region = 62 }

// kernel: net_forward.4
= control target key start
LH: loop header
LB: loop body
LE: loop exit
PB: predicated region body
PF: predicated region fallthrough
CT: control target
= control target key end

     0   :  { %vm860_vm0 = vcmask 1043456   ;;  %vm811_vm1 = vcmask 719872   ;;  %s2339_s28 = smov 32   ;;  %s2340_s29 = smov 96   ;;  %vm1706_vm2 = vcmask 130048   ;;  %s3298_s1 = inlined_call_operand.vmem [shape: bf16[600,128], index: 1, kind: input, shape index: {}]   ;;  %s3299_s0 = inlined_call_operand.vmem [shape: bf16[256,600], index: 0, kind: input, shape index: {}]   ;;  %s3300_s2 = inlined_call_operand.vmem [shape: f32[1,128], index: 2, kind: input, shape index: {}]   ;;  %s3301_s3 = inlined_call_operand.vmem [shape: f32[256,16], index: 3, kind: output, shape index: {}]  }
   0x1   :  { %v2188_v0 = vld [vmem:[%s3298_s1 + $0x40] sm:$0xff]   ;;  %v2190_v2 = vld [vmem:[%s3298_s1 + $0x48] sm:$0xff]   ;;  %v2192_v4 = vld [vmem:[%s3298_s1 + $0x50] sm:$0xff]  }
   0x2   :  { %v2189_v1 = vld [vmem:[%s3298_s1] sm:$0xff]   ;;  %1878 = vmatprep.subr.bf16.mxu0 %v2188_v0  ;;  %2168 = vmatprep.subr.bf16.mxu1 %v2188_v0  ;;  %v2191_v3 = vld [vmem:[%s3298_s1 + $0x8] sm:$0xff]   ;;  %v2193_v5 = vld [vmem:[%s3298_s1 + $0x10] sm:$0xff]  }
   0x3   :  { %1879 = vmatpush3.bf16.msra.mxu0 %v2189_v1  ;;  %2176 = vmatpush3.bf16.msra.mxu1 %v2189_v1  ;;  %v2194_v6 = vld [vmem:[%s3298_s1 + $0x58] sm:$0xff]   ;;  %v2196_v8 = vld [vmem:[%s3298_s1 + $0x60] sm:$0xff]   ;;  %v2198_v10 = vld [vmem:[%s3298_s1 + $0x68] sm:$0xff]  }
   0x4   :  { %1880 = vmatprep.subr.bf16.mxu0 %v2190_v2  ;;  %2169 = vmatprep.subr.bf16.mxu1 %v2190_v2  ;;  %v2195_v7 = vld [vmem:[%s3298_s1 + $0x18] sm:$0xff]   ;;  %v2197_v9 = vld [vmem:[%s3298_s1 + $0x20] sm:$0xff]   ;;  %v2199_v13 = vld [vmem:[%s3298_s1 + $0x28] sm:$0xff]  }
   0x5   :  { %v2206_v11 = vld [vmem:[%s3299_s0 + $0x4] ss:$20 sps:$4 sm:$0xff]   ;;  %v2200_v14 = vld [vmem:[%s3298_s1 + $0x70] sm:$0xff]   ;;  %v2213_v23 = vld [vmem:[%s3298_s1 + $0xc8] sm:$0xff]  }
   0x6   :  { %v2209_v12 = vld [vmem:[%s3299_s0 + $0x1e4] ss:$20 sps:$4 sm:$0xff]   ;;  %896 = vmatprep.mubr.bf16.mxu0 %v2206_v11  ;;  %v2201_v15 = vld [vmem:[%s3298_s1 + $0x30] sm:$0xff]   ;;  %v2215_v24 = vld [vmem:[%s3299_s0 + $0x2c] ss:$20 sps:$4 sm:$0xff]  }
   0x7   :  { %1881 = vmatpush3.bf16.msra.mxu0 %v2191_v3  ;;  %2177 = vmatpush3.bf16.msra.mxu1 %v2191_v3  ;;  %v2202_v16 = vld [vmem:[%s3298_s1 + $0x78] sm:$0xff]   ;;  %v2210_v18 = vld [vmem:[%s3298_s1 + $0xc0] sm:$0xff]   ;;  %v2232_v26 = vld [vmem:[%s3298_s1 + $0x108] sm:$0xff]  }
   0x8   :  { %1882 = vmatprep.subr.bf16.mxu0 %v2192_v4  ;;  %2170 = vmatprep.subr.bf16.mxu1 %v2192_v4  ;;  %v2203_v17 = vld [vmem:[%s3298_s1 + $0x38] sm:$0xff]   ;;  %v2211_v19 = vld [vmem:[%s3298_s1 + $0x100] sm:$0xff]   ;;  %v2214_v27 = vld [vmem:[%s3298_s1 + $0x88] sm:$0xff]  }
   0x9   :  { %992 = vmatprep.mubr.bf16.mxu1 %v2209_v12  ;;  %v2204_v20 = vld [vmem:[%s3299_s0] ss:$20 sps:$4 sm:$0xff]   ;;  %v2219_v28 = vld [vmem:[%s3299_s0 + $0x28] ss:$20 sps:$4 sm:$0xff]   ;;  %v2229_v36 = vld [vmem:[%s3299_s0 + $0x50] ss:$20 sps:$4 sm:$0xff]  }
   0xa   :  { %v2207_v21 = vld [vmem:[%s3299_s0 + $0x1e0] ss:$20 sps:$4 sm:$0xff]   ;;  %v2220_v30 = vld [vmem:[%s3299_s0 + $0x208] ss:$20 sps:$4 sm:$0xff]   ;;  %v2230_v38 = vld [vmem:[%s3299_s0 + $0x230] ss:$20 sps:$4 sm:$0xff]  }
   0xb   :  { %1883 = vmatpush3.bf16.msra.mxu0 %v2193_v5  ;;  %2178 = vmatpush3.bf16.msra.mxu1 %v2193_v5  ;;  %v2212_v22 = vld [vmem:[%s3298_s1 + $0x80] sm:$0xff]   ;;  %v2221_v29 = vld [vmem:[%s3298_s1 + $0xd0] sm:$0xff]   ;;  %v2223_v33 = vld [vmem:[%s3298_s1 + $0xd8] sm:$0xff]  }
   0xc   :  { %1884 = vmatprep.subr.bf16.mxu0 %v2194_v6  ;;  %2171 = vmatprep.subr.bf16.mxu1 %v2194_v6  ;;  %v2217_v25 = vld [vmem:[%s3299_s0 + $0x20c] ss:$20 sps:$4 sm:$0xff]   ;;  %v2222_v31 = vld [vmem:[%s3298_s1 + $0x90] sm:$0xff]   ;;  %v2224_v35 = vld [vmem:[%s3298_s1 + $0x98] sm:$0xff]  }
   0xd   :  { %v2225_v32 = vld [vmem:[%s3299_s0 + $0x54] ss:$20 sps:$4 sm:$0xff]   ;;  %v2231_v37 = vld [vmem:[%s3298_s1 + $0xe0] sm:$0xff]   ;;  %v2236_v41 = vld [vmem:[%s3299_s0 + $0x7c] ss:$20 sps:$4 sm:$0xff]  }
   0xe   :  { %v2227_v34 = vld [vmem:[%s3299_s0 + $0x234] ss:$20 sps:$4 sm:$0xff]   ;;  %v2233_v39 = vld [vmem:[%s3298_s1 + $0xa0] sm:$0xff]   ;;  %v2238_v42 = vld [vmem:[%s3299_s0 + $0x25c] ss:$20 sps:$4 sm:$0xff]  }
   0xf   :  { %1885 = vmatpush3.bf16.msra.mxu0 %v2195_v7  ;;  %2179 = vmatpush3.bf16.msra.mxu1 %v2195_v7  ;;  %v2234_v40 = vld [vmem:[%s3298_s1 + $0xe8] sm:$0xff]   ;;  %v2252_v43 = vld [vmem:[%s3298_s1 + $0x110] sm:$0xff]   ;;  %v2265_v49 = vld [vmem:[%s3298_s1 + $0x118] sm:$0xff]  }
  0x10   :  { %1886 = vmatprep.subr.bf16.mxu0 %v2196_v8  ;;  %2172 = vmatprep.subr.bf16.mxu1 %v2196_v8  ;;  %v2235_v44 = vld [vmem:[%s3298_s1 + $0xa8] sm:$0xff]   ;;  %v2242_v46 = vld [vmem:[%s3298_s1 + $0xf0] sm:$0xff]   ;;  %v2246_v50 = vld [vmem:[%s3299_s0 + $0xa4] ss:$20 sps:$4 sm:$0xff]  }
  0x11   :  { %v2240_v45 = vld [vmem:[%s3299_s0 + $0x78] ss:$20 sps:$4 sm:$0xff]   ;;  %v2243_v48 = vld [vmem:[%s3298_s1 + $0xb0] sm:$0xff]   ;;  %v2278_v54 = vld [vmem:[%s3298_s1 + $0x120] sm:$0xff]  }
  0x12   :  { %v2241_v47 = vld [vmem:[%s3299_s0 + $0x258] ss:$20 sps:$4 sm:$0xff]   ;;  %v2248_v55 = vld [vmem:[%s3299_s0 + $0x8] ss:$20 sps:$4 sm:$0xff]   ;;  %v2251_v56 = vld [vmem:[%s3299_s0 + $0xa0] ss:$20 sps:$4 sm:$0xff]  }
  0x13   :  { %1887 = vmatpush3.bf16.msra.mxu0 %v2197_v9  ;;  %2180 = vmatpush3.bf16.msra.mxu1 %v2197_v9  ;;  %v2244_v51 = vld [vmem:[%s3298_s1 + $0xf8] sm:$0xff]   ;;  %v2250_v52 = vld [vmem:[%s3299_s0 + $0xc] ss:$20 sps:$4 sm:$0xff]   ;;  %v2255_v58 = vld [vmem:[%s3299_s0 + $0x34] ss:$20 sps:$4 sm:$0xff]  }
  0x14   :  { %1888 = vmatprep.subr.bf16.mxu0 %v2198_v10  ;;  %2173 = vmatprep.subr.bf16.mxu1 %v2198_v10  ;;  %v2245_v53 = vld [vmem:[%s3298_s1 + $0xb8] sm:$0xff]   ;;  %v2253_v57 = vld [vmem:[%s3299_s0 + $0xcc] ss:$20 sps:$4 sm:$0xff]   ;;  %v2291_v59 = vld [vmem:[%s3298_s1 + $0x128] ss:$0 sps:$4 sm:$0xff]  }
  0x15   :  { %v862_v60 = vsel %vm860_vm0, %v2291_v59, 0  ;;  %v2257_v61 = vld [vmem:[%s3299_s0 + $0xc8] ss:$20 sps:$4 sm:$0xff]   ;;  %v2258_v62 = vld [vmem:[%s3299_s0 + $0x30] ss:$20 sps:$4 sm:$0xff]  }
  0x16   :  { %v2259_v63 = vld [vmem:[%s3299_s0 + $0xf4] ss:$20 sps:$4 sm:$0xff]   ;;  %v2261_v0 = vld [vmem:[%s3299_s0 + $0x5c] ss:$20 sps:$4 sm:$0xff]   ;;  %v2264_v2 = vld [vmem:[%s3299_s0 + $0x58] ss:$20 sps:$4 sm:$0xff]  }
  0x17   :  { %1889 = vmatpush3.bf16.msra.mxu0 %v2199_v13  ;;  %2181 = vmatpush3.bf16.msra.mxu1 %v2199_v13  ;;  %v2263_v1 = vld [vmem:[%s3299_s0 + $0xf0] ss:$20 sps:$4 sm:$0xff]   ;;  %v2270_v5 = vld [vmem:[%s3299_s0 + $0x118] ss:$20 sps:$4 sm:$0xff]   ;;  %v2271_v6 = vld [vmem:[%s3299_s0 + $0x80] ss:$20 sps:$4 sm:$0xff]  }
  0x18   :  { %1890 = vmatprep.subr.bf16.mxu0 %v2200_v14  ;;  %2174 = vmatprep.subr.bf16.mxu1 %v2200_v14  ;;  %v2266_v3 = vld [vmem:[%s3299_s0 + $0x11c] ss:$20 sps:$4 sm:$0xff]   ;;  %v2268_v4 = vld [vmem:[%s3299_s0 + $0x84] ss:$20 sps:$4 sm:$0xff]   ;;  %v2274_v8 = vld [vmem:[%s3299_s0 + $0xac] ss:$20 sps:$4 sm:$0xff]  }
  0x19   :  { %v2272_v7 = vld [vmem:[%s3299_s0 + $0x144] ss:$20 sps:$4 sm:$0xff]   ;;  %v2276_v9 = vld [vmem:[%s3299_s0 + $0x140] ss:$20 sps:$4 sm:$0xff]   ;;  %v2277_v10 = vld [vmem:[%s3299_s0 + $0xa8] ss:$20 sps:$4 sm:$0xff]  }
  0x1a   :  { %v2279_v11 = vld [vmem:[%s3299_s0 + $0x16c] ss:$20 sps:$4 sm:$0xff]   ;;  %v2281_v12 = vld [vmem:[%s3299_s0 + $0xd4] ss:$20 sps:$4 sm:$0xff]   ;;  %v2284_v14 = vld [vmem:[%s3299_s0 + $0xd0] ss:$20 sps:$4 sm:$0xff]  }
  0x1b   :  { %1891 = vmatpush3.bf16.msra.mxu0 %v2201_v15  ;;  %2182 = vmatpush3.bf16.msra.mxu1 %v2201_v15  ;;  %v2283_v13 = vld [vmem:[%s3299_s0 + $0x168] ss:$20 sps:$4 sm:$0xff]  }
  0x1c   :  { %1892 = vmatprep.subr.bf16.mxu0 %v2202_v16  ;;  %2175 = vmatprep.subr.bf16.mxu1 %v2202_v16  ;;  %v2285_v15 = vld [vmem:[%s3299_s0 + $0x194] ss:$20 sps:$4 sm:$0xff]   ;;  %v2287_v16 = vld [vmem:[%s3299_s0 + $0xfc] ss:$20 sps:$4 sm:$0xff]  }
  0x1f   :  { %1893 = vmatpush3.bf16.msra.mxu0 %v2203_v17  ;;  %2183 = vmatpush3.bf16.msra.mxu1 %v2203_v17  ;;  %v2289_v17 = vld [vmem:[%s3299_s0 + $0x190] ss:$20 sps:$4 sm:$0xff]  }
  0x20   :  { %1990 = vmatprep.subr.bf16.mxu1 %v2210_v18  ;;  %2124 = vmatprep.subr.bf16.mxu0 %v2211_v19  ;;  %v2290_v18 = vld [vmem:[%s3299_s0 + $0xf8] ss:$20 sps:$4 sm:$0xff]  }
  0x22   :  { %897 = vmatmul.mubr.bf16.vlgmr.msra.gmra.mrb[0].mxu0 %v2204_v20  ;;  %993 = vmatmul.mubr.bf16.vlgmr.msra.gmra.mrb[0].mxu1 %v2207_v21  ;;  %v2294_v20 = vld [vmem:[%s3299_s0 + $0x124] ss:$20 sps:$4 sm:$0xff]  }
  0x23   :  { %1991 = vmatpush3.bf16.msra.mxu1 %v2212_v22  ;;  %2125 = vmatpush3.bf16.msra.mxu0 %v2211_v19  ;;  %v2292_v19 = vld [vmem:[%s3299_s0 + $0x1bc] ss:$20 sps:$4 sm:$0xff]   ;;  %v2296_v21 = vld [vmem:[%s3299_s0 + $0x1b8] ss:$20 sps:$4 sm:$0xff]   ;;  %v2297_v22 = vld [vmem:[%s3299_s0 + $0x120] ss:$20 sps:$4 sm:$0xff]  }
  0x24   :  { %1992 = vmatprep.subr.bf16.mxu1 %v2213_v23  ;;  %904 = vmatprep.mubr.bf16.mxu0 %v2215_v24  ;;  %v2298_v23 = vld [vmem:[%s3299_s0 + $0x14c] ss:$20 sps:$4 sm:$0xff]   ;;  %v2300_v24 = vld [vmem:[%s3299_s0 + $0x10] ss:$20 sps:$4 sm:$0xff]  }
  0x25   :  { %1000 = vmatprep.mubr.bf16.mxu1 %v2217_v25  ;;  %2126 = vmatprep.subr.bf16.mxu0 %v2232_v26  ;;  %v2301_v25 = vld [vmem:[%s3299_s0 + $0x148] ss:$20 sps:$4 sm:$0xff]  }
  0x27   :  { %1993 = vmatpush3.bf16.msra.mxu1 %v2214_v27  ;;  %2127 = vmatpush3.bf16.msra.mxu0 %v2232_v26  ;;  %v2302_v26 = vld [vmem:[%s3299_s0 + $0x38] ss:$20 sps:$4 sm:$0xff]   ;;  %v2303_v27 = vld [vmem:[%s3299_s0 + $0x174] ss:$20 sps:$4 sm:$0xff]  }
  0x28   :  { %1994 = vmatprep.subr.bf16.mxu1 %v2221_v29  ;;  %2128 = vmatprep.subr.bf16.mxu0 %v2252_v43  ;;  %v2306_v29 = vld [vmem:[%s3299_s0 + $0x170] ss:$20 sps:$4 sm:$0xff]  }
  0x2a   :  { %905 = vmatmul.mubr.bf16.gmra.mrb[4].mxu0 %v2219_v28  ;;  %1001 = vmatmul.mubr.bf16.gmra.mrb[4].mxu1 %v2220_v30  ;;  %v2305_v28 = vld [vmem:[%s3299_s0 + $0x60] ss:$20 sps:$4 sm:$0xff]   ;;  %v2307_v30 = vld [vmem:[%s3299_s0 + $0x88] ss:$20 sps:$4 sm:$0xff]  }
  0x2b   :  { %1995 = vmatpush3.bf16.msra.mxu1 %v2222_v31  ;;  %912 = vmatprep.mubr.bf16.mxu0 %v2225_v32  ;;  %v2308_v31 = vld [vmem:[%s3299_s0 + $0x19c] ss:$20 sps:$4 sm:$0xff]  }
  0x2c   :  { %1996 = vmatprep.subr.bf16.mxu1 %v2223_v33  ;;  %1008 = vmatprep.mubr.bf16.mxu1 %v2227_v34  ;;  %v2310_v32 = vld [vmem:[%s3299_s0 + $0xb0] ss:$20 sps:$4 sm:$0xff]   ;;  %v2311_v33 = vld [vmem:[%s3299_s0 + $0x198] ss:$20 sps:$4 sm:$0xff]  }
  0x2d   :  { %2129 = vmatpush3.bf16.msra.mxu0 %v2252_v43  ;;  %v2312_v34 = vld [vmem:[%s3299_s0 + $0xd8] ss:$20 sps:$4 sm:$0xff]   ;;  %v2323_v43 = vld [vmem:[%s3299_s0 + $0x214] ss:$20 sps:$4 sm:$0xff]  }
  0x2e   :  { %2130 = vmatprep.subr.bf16.mxu0 %v2265_v49 }
  0x2f   :  { %1997 = vmatpush3.bf16.msra.mxu1 %v2224_v35  ;;  %v2313_v35 = vld [vmem:[%s3299_s0 + $0x1c4] ss:$20 sps:$4 sm:$0xff]  }
  0x30   :  { %1998 = vmatprep.subr.bf16.mxu1 %v2231_v37  ;;  %v2316_v37 = vld [vmem:[%s3299_s0 + $0x1c0] ss:$20 sps:$4 sm:$0xff]  }
  0x31   :  { %2131 = vmatpush3.bf16.msra.mxu0 %v2265_v49  ;;  %v2331_v49 = vld [vmem:[%s3299_s0 + $0x238] ss:$20 sps:$4 sm:$0xff]  }
  0x32   :  { %913 = vmatmul.mubr.bf16.gmra.mrb[8].mxu0 %v2229_v36  ;;  %1009 = vmatmul.mubr.bf16.gmra.mrb[8].mxu1 %v2230_v38  ;;  %v2315_v36 = vld [vmem:[%s3299_s0 + $0x100] ss:$20 sps:$4 sm:$0xff]   ;;  %v2317_v38 = vld [vmem:[%s3299_s0 + $0x128] ss:$20 sps:$4 sm:$0xff]  }
  0x33   :  { %1999 = vmatpush3.bf16.msra.mxu1 %v2233_v39  ;;  %920 = vmatprep.mubr.bf16.mxu0 %v2236_v41  ;;  %v2318_v39 = vld [vmem:[%s3299_s0 + $0x1ec] ss:$20 sps:$4 sm:$0xff]   ;;  %v2321_v41 = vld [vmem:[%s3299_s0 + $0x1e8] ss:$20 sps:$4 sm:$0xff]  }
  0x34   :  { %2000 = vmatprep.subr.bf16.mxu1 %v2234_v40  ;;  %1016 = vmatprep.mubr.bf16.mxu1 %v2238_v42  ;;  %v2320_v40 = vld [vmem:[%s3299_s0 + $0x150] ss:$20 sps:$4 sm:$0xff]   ;;  %v2322_v42 = vld [vmem:[%s3299_s0 + $0x178] ss:$20 sps:$4 sm:$0xff]  }
  0x35   :  { %2132 = vmatprep.subr.bf16.mxu0 %v2278_v54 }
  0x36   :  { %2133 = vmatpush3.bf16.msra.mxu0 %v2278_v54  ;;  %v2337_v54 = vld [vmem:[%s3299_s0 + $0x268] ss:$20 sps:$4 sm:$0xff]  }
  0x37   :  { %2001 = vmatpush3.bf16.msra.mxu1 %v2235_v44  ;;  %2184 = vmatprep.subr.msk.bf16.mxu0 %vm860_vm0, %v2291_v59  ;;  %v2325_v44 = vld [vmem:[%s3299_s0 + $0x1a0] ss:$20 sps:$4 sm:$0xff]  }
  0x38   :  { %2002 = vmatprep.subr.bf16.mxu1 %v2242_v46  ;;  %v2327_v46 = vld [vmem:[%s3299_s0 + $0x1c8] ss:$20 sps:$4 sm:$0xff]  }
  0x3a   :  { %921 = vmatmul.mubr.bf16.gmra.mrb[12].mxu0 %v2240_v45  ;;  %1017 = vmatmul.mubr.bf16.gmra.mrb[12].mxu1 %v2241_v47  ;;  %v2326_v45 = vld [vmem:[%s3299_s0 + $0x210] ss:$20 sps:$4 sm:$0xff]  }
  0x3b   :  { %2003 = vmatpush3.bf16.msra.mxu1 %v2243_v48  ;;  %928 = vmatprep.mubr.bf16.mxu0 %v2246_v50  ;;  %v2328_v47 = vld [vmem:[%s3299_s0 + $0x23c] ss:$20 sps:$4 sm:$0xff]   ;;  %v2332_v50 = vld [vmem:[%s3299_s0 + $0x218] ss:$20 sps:$4 sm:$0xff]  }
  0x3c   :  { %2004 = vmatprep.subr.bf16.mxu1 %v2244_v51  ;;  %1057 = vmatprep.mubr.bf16.mxu1 %v2250_v52  ;;  %v2330_v48 = vld [vmem:[%s3299_s0 + $0x1f0] ss:$20 sps:$4 sm:$0xff]   ;;  %v2335_v52 = vld [vmem:[%s3299_s0 + $0x240] ss:$20 sps:$4 sm:$0xff]  }
  0x3d   :  { %2135 = vmatpush3.bf16.msra.mxu0 %v862_v60  ;;  %v2333_v51 = vld [vmem:[%s3299_s0 + $0x264] ss:$20 sps:$4 sm:$0xff]  }
  0x3f   :  { %2005 = vmatpush3.bf16.msra.mxu1 %v2245_v53  ;;  %v2336_v53 = vld [vmem:[%s3299_s0 + $0x260] ss:$20 sps:$4 sm:$0xff]   ;;  %s2338_s0 = smov 64  }
  0x42   :  { %929 = vmatmul.mubr.bf16.gmra.mrb[16].mxu0 %v2251_v56  ;;  %1058 = vmatmul.mubr.bf16.vlgmr.msra.gmra.mrb[16].mxu1 %v2248_v55 }
  0x43   :  { %936 = vmatprep.mubr.bf16.mxu0 %v2253_v57  ;;  %1065 = vmatprep.mubr.bf16.mxu1 %v2255_v58 }
  0x4a   :  { %937 = vmatmul.mubr.bf16.gmra.mrb[20].mxu0 %v2257_v61  ;;  %1066 = vmatmul.mubr.bf16.gmra.mrb[20].mxu1 %v2258_v62 }
  0x4b   :  { %944 = vmatprep.mubr.bf16.mxu0 %v2259_v63  ;;  %1073 = vmatprep.mubr.bf16.mxu1 %v2261_v0 }
  0x52   :  { %945 = vmatmul.mubr.bf16.gmra.mrb[24].mxu0 %v2263_v1  ;;  %1074 = vmatmul.mubr.bf16.gmra.mrb[24].mxu1 %v2264_v2 }
  0x53   :  { %952 = vmatprep.mubr.bf16.mxu0 %v2266_v3  ;;  %1081 = vmatprep.mubr.bf16.mxu1 %v2268_v4 }
  0x5a   :  { %953 = vmatmul.mubr.bf16.gmra.mrb[28].mxu0 %v2270_v5  ;;  %1082 = vmatmul.mubr.bf16.gmra.mrb[28].mxu1 %v2271_v6 }
  0x5b   :  { %960 = vmatprep.mubr.bf16.mxu0 %v2272_v7  ;;  %1089 = vmatprep.mubr.bf16.mxu1 %v2274_v8 }
  0x62   :  { %961 = vmatmul.mubr.bf16.gmra.mrb[32].mxu0 %v2276_v9  ;;  %1090 = vmatmul.mubr.bf16.gmra.mrb[32].mxu1 %v2277_v10 }
  0x63   :  { %968 = vmatprep.mubr.bf16.mxu0 %v2279_v11  ;;  %1097 = vmatprep.mubr.bf16.mxu1 %v2281_v12 }
  0x6a   :  { %969 = vmatmul.mubr.bf16.gmra.mrb[36].mxu0 %v2283_v13  ;;  %1098 = vmatmul.mubr.bf16.gmra.mrb[36].mxu1 %v2284_v14 }
  0x6b   :  { %976 = vmatprep.mubr.bf16.mxu0 %v2285_v15  ;;  %1105 = vmatprep.mubr.bf16.mxu1 %v2287_v16 }
  0x72   :  { %977 = vmatmul.mubr.bf16.gmra.mrb[40].mxu0 %v2289_v17  ;;  %1106 = vmatmul.mubr.bf16.gmra.mrb[40].mxu1 %v2290_v18 }
  0x73   :  { %984 = vmatprep.mubr.bf16.mxu0 %v2292_v19  ;;  %1113 = vmatprep.mubr.bf16.mxu1 %v2294_v20 }
  0x7a   :  { %985 = vmatmul.mubr.bf16.gmra.mrb[44].mxu0 %v2296_v21  ;;  %1114 = vmatmul.mubr.bf16.gmra.mrb[44].mxu1 %v2297_v22 }
  0x7b   :  { %1121 = vmatprep.mubr.bf16.mxu1 %v2298_v23  ;;  %2136 = vmatprep.mubr.msk.bf16.mxu0 %vm811_vm1, %v2300_v24 }
  0x82   :  { %1122 = vmatmul.mubr.bf16.gmra.mrb[48].mxu1 %v2301_v25  ;;  %2137 = vmatmul.mubr.msk.bf16.vlgmr.msra.gmra.mrb[48].mxu0 %vm811_vm1, %v2302_v26 }
  0x83   :  { %1129 = vmatprep.mubr.bf16.mxu1 %v2303_v27  ;;  %2140 = vmatprep.mubr.msk.bf16.mxu0 %vm811_vm1, %v2305_v28 }
  0x8a   :  { %1130 = vmatmul.mubr.bf16.gmra.mrb[52].mxu1 %v2306_v29  ;;  %2141 = vmatmul.mubr.msk.bf16.gmra.mrb[52].mxu0 %vm811_vm1, %v2307_v30 }
  0x8b   :  { %1137 = vmatprep.mubr.bf16.mxu1 %v2308_v31  ;;  %2144 = vmatprep.mubr.msk.bf16.mxu0 %vm811_vm1, %v2310_v32 }
  0x92   :  { %1138 = vmatmul.mubr.bf16.gmra.mrb[56].mxu1 %v2311_v33  ;;  %2145 = vmatmul.mubr.msk.bf16.gmra.mrb[56].mxu0 %vm811_vm1, %v2312_v34 }
  0x93   :  { %1145 = vmatprep.mubr.bf16.mxu1 %v2313_v35  ;;  %2148 = vmatprep.mubr.msk.bf16.mxu0 %vm811_vm1, %v2315_v36 }
  0x9a   :  { %1146 = vmatmul.mubr.bf16.gmra.mrb[60].mxu1 %v2316_v37  ;;  %2149 = vmatmul.mubr.msk.bf16.gmra.mrb[60].mxu0 %vm811_vm1, %v2317_v38 }
  0x9b   :  { %1153 = vmatprep.mubr.bf16.mxu1 %v2318_v39  ;;  %2152 = vmatprep.mubr.msk.bf16.mxu0 %vm811_vm1, %v2320_v40 }
  0xa2   :  { %1154 = vmatmul.mubr.bf16.gmra.mrb[64].mxu1 %v2321_v41  ;;  %2153 = vmatmul.mubr.msk.bf16.gmra.mrb[64].mxu0 %vm811_vm1, %v2322_v42 }
  0xa3   :  { %1161 = vmatprep.mubr.bf16.mxu1 %v2323_v43  ;;  %2156 = vmatprep.mubr.msk.bf16.mxu0 %vm811_vm1, %v2325_v44 }
  0xaa   :  { %1162 = vmatmul.mubr.bf16.gmra.mrb[68].mxu1 %v2326_v45  ;;  %2157 = vmatmul.mubr.msk.bf16.gmra.mrb[68].mxu0 %vm811_vm1, %v2327_v46 }
  0xab   :  { %1169 = vmatprep.mubr.bf16.mxu1 %v2328_v47  ;;  %2160 = vmatprep.mubr.msk.bf16.mxu0 %vm811_vm1, %v2330_v48 }
  0xb2   :  { %1170 = vmatmul.mubr.bf16.gmra.mrb[72].mxu1 %v2331_v49  ;;  %2161 = vmatmul.mubr.msk.bf16.gmra.mrb[72].mxu0 %vm811_vm1, %v2332_v50 }
  0xb3   :  { %1177 = vmatprep.mubr.bf16.mxu1 %v2333_v51  ;;  %2164 = vmatprep.mubr.msk.bf16.mxu0 %vm811_vm1, %v2335_v52 }
  0xba   :  { %1178 = vmatmul.mubr.bf16.gmra.mrb[76].mxu1 %v2336_v53  ;;  %2165 = vmatmul.mubr.msk.bf16.gmra.mrb[76].mxu0 %vm811_vm1, %v2337_v54 }
  0xf5   :  { %v1894_v55 = vpop.f32.mrb[0].mxu0  ;;  %v1966_v56 = vpop.f32.mrb[0].mxu1 }
  0xf6   :  { %v1895_v57 = vpop.f32.mrb[1].mxu0  ;;  %v1967_v58 = vpop.f32.mrb[1].mxu1 }
  0xf7   :  { %v1896_v59 = vadd.f32 %v1895_v57, %v1894_v55  ;;  %v1897_v60 = vpop.f32.mrb[2].mxu0  ;;  %v2731_v61 = vadd.f32 %v1967_v58, %v1966_v56  ;;  %v1969_v62 = vpop.f32.mrb[2].mxu1 }
  0xf8   :  { %v1898_v63 = vpop.f32.mrb[3].mxu0  ;;  %v1970_v0 = vpop.f32.mrb[3].mxu1 }
  0xf9   :  { %v1899_v1 = vadd.f32 %v1898_v63, %v1897_v60  ;;  %v2733_v2 = vadd.f32 %v1970_v0, %v1969_v62 }
  0xfd   :  { %v1900_v3 = vpop.f32.mrb[4].mxu0  ;;  %v1972_v4 = vpop.f32.mrb[4].mxu1 }
  0xfe   :  { %v1901_v5 = vpop.f32.mrb[5].mxu0  ;;  %v1973_v6 = vpop.f32.mrb[5].mxu1 }
  0xff   :  { %v1902_v7 = vadd.f32 %v1901_v5, %v1900_v3  ;;  %v1903_v8 = vpop.f32.mrb[6].mxu0  ;;  %v2735_v9 = vadd.f32 %v1973_v6, %v1972_v4  ;;  %v1975_v10 = vpop.f32.mrb[6].mxu1 }
 0x100   :  { %v1904_v11 = vpop.f32.mrb[7].mxu0  ;;  %v1976_v12 = vpop.f32.mrb[7].mxu1 }
 0x101   :  { %v1905_v13 = vadd.f32 %v1904_v11, %v1903_v8  ;;  %v2737_v14 = vadd.f32 %v1976_v12, %v1975_v10 }
 0x105   :  { %v1906_v15 = vpop.f32.mrb[8].mxu0  ;;  %v1978_v16 = vpop.f32.mrb[8].mxu1 }
 0x106   :  { %v1907_v17 = vpop.f32.mrb[9].mxu0  ;;  %v1979_v18 = vpop.f32.mrb[9].mxu1 }
 0x107   :  { %v1908_v19 = vadd.f32 %v1907_v17, %v1906_v15  ;;  %v1909_v20 = vpop.f32.mrb[10].mxu0  ;;  %v2739_v21 = vadd.f32 %v1979_v18, %v1978_v16  ;;  %v1981_v22 = vpop.f32.mrb[10].mxu1 }
 0x108   :  { %v1910_v23 = vpop.f32.mrb[11].mxu0  ;;  %v1982_v24 = vpop.f32.mrb[11].mxu1 }
 0x109   :  { %v1911_v25 = vadd.f32 %v1910_v23, %v1909_v20  ;;  %v2741_v26 = vadd.f32 %v1982_v24, %v1981_v22 }
 0x10d   :  { %v1912_v27 = vpop.f32.mrb[12].mxu0  ;;  %v1984_v28 = vpop.f32.mrb[12].mxu1 }
 0x10e   :  { %v1913_v29 = vpop.f32.mrb[13].mxu0  ;;  %v1985_v30 = vpop.f32.mrb[13].mxu1 }
 0x10f   :  { %v1914_v31 = vadd.f32 %v1913_v29, %v1912_v27  ;;  %v1915_v32 = vpop.f32.mrb[14].mxu0  ;;  %v2743_v33 = vadd.f32 %v1985_v30, %v1984_v28  ;;  %v1987_v34 = vpop.f32.mrb[14].mxu1 }
 0x110   :  { %v1916_v35 = vpop.f32.mrb[15].mxu0  ;;  %v1988_v36 = vpop.f32.mrb[15].mxu1 }
 0x111   :  { %v1917_v37 = vadd.f32 %v1916_v35, %v1915_v32  ;;  %v2745_v38 = vadd.f32 %v1988_v36, %v1987_v34 }
 0x115   :  { %v1918_v39 = vpop.f32.mrb[16].mxu0  ;;  %v2006_v40 = vpop.f32.mrb[16].mxu1 }
 0x116   :  { %v1919_v41 = vpop.f32.mrb[17].mxu0  ;;  %v2007_v42 = vpop.f32.mrb[17].mxu1 }
 0x117   :  { %v2747_v43 = vadd.f32 %v1919_v41, %v1918_v39  ;;  %v2008_v44 = vadd.f32 %v2007_v42, %v2006_v40  ;;  %v1921_v45 = vpop.f32.mrb[18].mxu0  ;;  %v2009_v46 = vpop.f32.mrb[18].mxu1 }
 0x118   :  { %v1922_v47 = vpop.f32.mrb[19].mxu0  ;;  %v2010_v48 = vpop.f32.mrb[19].mxu1 }
 0x119   :  { %v1923_v49 = vadd.f32 %v1922_v47, %v1921_v45  ;;  %v2011_v50 = vadd.f32 %v2010_v48, %v2009_v46  ;;  %v2749_v51 = vadd.f32 %v2008_v44, %v1896_v59 }
 0x11b   :  { %v2751_v52 = vadd.f32 %v2011_v50, %v1899_v1 }
 0x11d   :  { %v1924_v53 = vpop.f32.mrb[20].mxu0  ;;  %v2012_v54 = vpop.f32.mrb[20].mxu1 }
 0x11e   :  { %v1925_v55 = vpop.f32.mrb[21].mxu0  ;;  %v2013_v56 = vpop.f32.mrb[21].mxu1 }
 0x11f   :  { %v2753_v57 = vadd.f32 %v1925_v55, %v1924_v53  ;;  %v2014_v58 = vadd.f32 %v2013_v56, %v2012_v54  ;;  %v1927_v60 = vpop.f32.mrb[22].mxu0  ;;  %v2015_v62 = vpop.f32.mrb[22].mxu1 }
 0x120   :  { %v1928_v63 = vpop.f32.mrb[23].mxu0  ;;  %v2016_v0 = vpop.f32.mrb[23].mxu1 }
 0x121   :  { %v1929_v3 = vadd.f32 %v1928_v63, %v1927_v60  ;;  %v2017_v4 = vadd.f32 %v2016_v0, %v2015_v62  ;;  %v2755_v5 = vadd.f32 %v2014_v58, %v1902_v7 }
 0x123   :  { %v2757_v6 = vadd.f32 %v2017_v4, %v1905_v13 }
 0x125   :  { %v1930_v59 = vpop.f32.mrb[24].mxu0  ;;  %v2018_v1 = vpop.f32.mrb[24].mxu1 }
 0x126   :  { %v1931_v8 = vpop.f32.mrb[25].mxu0  ;;  %v2019_v10 = vpop.f32.mrb[25].mxu1 }
 0x127   :  { %v2759_v11 = vadd.f32 %v1931_v8, %v1930_v59  ;;  %v2020_v12 = vadd.f32 %v2019_v10, %v2018_v1  ;;  %v1933_v15 = vpop.f32.mrb[26].mxu0  ;;  %v2021_v16 = vpop.f32.mrb[26].mxu1 }
 0x128   :  { %v1934_v17 = vpop.f32.mrb[27].mxu0  ;;  %v2022_v18 = vpop.f32.mrb[27].mxu1 }
 0x129   :  { %v1935_v20 = vadd.f32 %v1934_v17, %v1933_v15  ;;  %v2023_v22 = vadd.f32 %v2022_v18, %v2021_v16  ;;  %v2761_v23 = vadd.f32 %v2020_v12, %v1908_v19 }
 0x12b   :  { %v2763_v24 = vadd.f32 %v2023_v22, %v1911_v25 }
 0x12d   :  { %v1936_v7 = vpop.f32.mrb[28].mxu0  ;;  %v2024_v13 = vpop.f32.mrb[28].mxu1 }
 0x12e   :  { %v1937_v27 = vpop.f32.mrb[29].mxu0  ;;  %v2025_v28 = vpop.f32.mrb[29].mxu1 }
 0x12f   :  { %v2765_v29 = vadd.f32 %v1937_v27, %v1936_v7  ;;  %v2026_v30 = vadd.f32 %v2025_v28, %v2024_v13  ;;  %v1939_v32 = vpop.f32.mrb[30].mxu0  ;;  %v2027_v34 = vpop.f32.mrb[30].mxu1 }
 0x130   :  { %v1940_v35 = vpop.f32.mrb[31].mxu0  ;;  %v2028_v36 = vpop.f32.mrb[31].mxu1 }
 0x131   :  { %v1941_v39 = vadd.f32 %v1940_v35, %v1939_v32  ;;  %v2029_v40 = vadd.f32 %v2028_v36, %v2027_v34  ;;  %v2767_v41 = vadd.f32 %v2026_v30, %v1914_v31 }
 0x133   :  { %v2769_v42 = vadd.f32 %v2029_v40, %v1917_v37 }
 0x135   :  { %v1942_v19 = vpop.f32.mrb[32].mxu0  ;;  %v2030_v25 = vpop.f32.mrb[32].mxu1 }
 0x136   :  { %v1943_v44 = vpop.f32.mrb[33].mxu0  ;;  %v2031_v45 = vpop.f32.mrb[33].mxu1 }
 0x137   :  { %v2771_v46 = vadd.f32 %v1943_v44, %v1942_v19  ;;  %v2032_v47 = vadd.f32 %v2031_v45, %v2030_v25  ;;  %v1945_v48 = vpop.f32.mrb[34].mxu0  ;;  %v2033_v50 = vpop.f32.mrb[34].mxu1 }
 0x138   :  { %v1946_v53 = vpop.f32.mrb[35].mxu0  ;;  %v2034_v54 = vpop.f32.mrb[35].mxu1 }
 0x139   :  { %v2773_v55 = vadd.f32 %v1946_v53, %v1945_v48  ;;  %v2035_v56 = vadd.f32 %v2034_v54, %v2033_v50  ;;  %v2776_v58 = vadd.f32 %v2032_v47, %v2747_v43 }
 0x13b   :  { %v2778_v31 = vadd.f32 %v2035_v56, %v1923_v49 }
 0x13d   :  { %v1948_v37 = vpop.f32.mrb[36].mxu0  ;;  %v2036_v60 = vpop.f32.mrb[36].mxu1 }
 0x13e   :  { %v1949_v62 = vpop.f32.mrb[37].mxu0  ;;  %v2037_v63 = vpop.f32.mrb[37].mxu1 }
 0x13f   :  { %v2780_v0 = vadd.f32 %v1949_v62, %v1948_v37  ;;  %v2038_v4 = vadd.f32 %v2037_v63, %v2036_v60  ;;  %v1951_v59 = vpop.f32.mrb[38].mxu0  ;;  %v2039_v1 = vpop.f32.mrb[38].mxu1 }
 0x140   :  { %v1952_v8 = vpop.f32.mrb[39].mxu0  ;;  %v2040_v10 = vpop.f32.mrb[39].mxu1 }
 0x141   :  { %v2782_v12 = vadd.f32 %v1952_v8, %v1951_v59  ;;  %v2041_v15 = vadd.f32 %v2040_v10, %v2039_v1  ;;  %v2785_v16 = vadd.f32 %v2038_v4, %v2753_v57 }
 0x143   :  { %v2787_v43 = vadd.f32 %v2041_v15, %v1929_v3 }
 0x145   :  { %v1954_v49 = vpop.f32.mrb[40].mxu0  ;;  %v2042_v17 = vpop.f32.mrb[40].mxu1 }
 0x146   :  { %v1955_v18 = vpop.f32.mrb[41].mxu0  ;;  %v2043_v22 = vpop.f32.mrb[41].mxu1 }
 0x147   :  { %v2789_v7 = vadd.f32 %v1955_v18, %v1954_v49  ;;  %v2044_v13 = vadd.f32 %v2043_v22, %v2042_v17  ;;  %v1957_v27 = vpop.f32.mrb[42].mxu0  ;;  %v2045_v28 = vpop.f32.mrb[42].mxu1 }
 0x148   :  { %v1958_v30 = vpop.f32.mrb[43].mxu0  ;;  %v2046_v32 = vpop.f32.mrb[43].mxu1 }
 0x149   :  { %v2791_v34 = vadd.f32 %v1958_v30, %v1957_v27  ;;  %v2047_v35 = vadd.f32 %v2046_v32, %v2045_v28  ;;  %v2794_v36 = vadd.f32 %v2044_v13, %v2759_v11 }
 0x14b   :  { %v2796_v57 = vadd.f32 %v2047_v35, %v1935_v20 }
 0x14d   :  { %v1960_v3 = vpop.f32.mrb[44].mxu0  ;;  %v2048_v40 = vpop.f32.mrb[44].mxu1 }
 0x14e   :  { %v1961_v19 = vpop.f32.mrb[45].mxu0  ;;  %v2049_v25 = vpop.f32.mrb[45].mxu1 }
 0x14f   :  { %v2798_v44 = vadd.f32 %v1961_v19, %v1960_v3  ;;  %v2050_v45 = vadd.f32 %v2049_v25, %v2048_v40  ;;  %v1963_v47 = vpop.f32.mrb[46].mxu0  ;;  %v2051_v48 = vpop.f32.mrb[46].mxu1 }
 0x150   :  { %v1964_v50 = vpop.f32.mrb[47].mxu0  ;;  %v2052_v53 = vpop.f32.mrb[47].mxu1 }
 0x151   :  { %v2800_v54 = vadd.f32 %v1964_v50, %v1963_v47  ;;  %v2053_v56 = vadd.f32 %v2052_v53, %v2051_v48  ;;  %v2803_v37 = vadd.f32 %v2050_v45, %v2765_v29 }
 0x153   :  { %v2805_v11 = vadd.f32 %v2053_v56, %v1941_v39 }
 0x155   :  { %v2054_v20 = vpop.f32.mrb[48].mxu1  ;;  %v2138_v60 = vpop.f32.mrb[48].mxu0 }
 0x156   :  { %v2808_v62 = vadd.f32 %v2138_v60, %v2755_v5  ;;  %v2055_v63 = vpop.f32.mrb[49].mxu1  ;;  %v1220_v4 = vpop.f32.mrb[49].mxu0 }
 0x157   :  { %v2056_v59 = vadd.f32 %v2055_v63, %v2054_v20  ;;  %v2811_v1 = vadd.f32 %v1220_v4, %v2749_v51  ;;  %v2057_v8 = vpop.f32.mrb[50].mxu1  ;;  %v2139_v10 = vpop.f32.mrb[50].mxu0 }
 0x158   :  { %v2814_v15 = vadd.f32 %v2139_v10, %v2757_v6  ;;  %v2058_v29 = vpop.f32.mrb[51].mxu1  ;;  %v1223_v49 = vpop.f32.mrb[51].mxu0  ;;  %1447 = vrot.lane.b32.xlu0 %v2808_v62, %s2338_s0  ;;  %1351 = vrot.lane.b32.xlu1 %v2808_v62, %s2339_s28 }
 0x159   :  { %v2059_v5 = vadd.f32 %v2058_v29, %v2057_v8  ;;  %v2821_v39 = vadd.f32 %v1223_v49, %v2751_v52  ;;  %v2824_v51 = vadd.f32 %v2056_v59, %v2771_v46 }
 0x15b   :  { %v2827_v6 = vadd.f32 %v2059_v5, %v2773_v55 }
 0x15c   :  { %1511 = vrot.lane.b32.xlu0 %v2808_v62, %s2340_s29  ;;  %1353 = vrot.lane.b32.xlu1 %v2814_v15, %s2339_s28 }
 0x15d   :  { %v2060_v17 = vpop.f32.mrb[52].mxu1  ;;  %v2142_v18 = vpop.f32.mrb[52].mxu0 }
 0x15e   :  { %v2834_v22 = vadd.f32 %v2142_v18, %v2767_v41  ;;  %v2061_v52 = vpop.f32.mrb[53].mxu1  ;;  %v1236_v13 = vpop.f32.mrb[53].mxu0 }
 0x15f   :  { %v2062_v27 = vadd.f32 %v2061_v52, %v2060_v17  ;;  %v2837_v46 = vadd.f32 %v1236_v13, %v2761_v23  ;;  %v2063_v55 = vpop.f32.mrb[54].mxu1  ;;  %v2143_v28 = vpop.f32.mrb[54].mxu0 }
 0x160   :  { %v2840_v30 = vadd.f32 %v2143_v28, %v2769_v42  ;;  %v2064_v32 = vpop.f32.mrb[55].mxu1  ;;  %v1239_v35 = vpop.f32.mrb[55].mxu0  ;;  %1449 = vrot.lane.b32.xlu1 %v2814_v15, %s2338_s0  ;;  %1347 = vrot.lane.b32.xlu0 %v2811_v1, %s2339_s28 }
 0x161   :  { %v2065_v41 = vadd.f32 %v2064_v32, %v2063_v55  ;;  %v2847_v3 = vadd.f32 %v1239_v35, %v2763_v24  ;;  %v1132_v23 = vadd.f32 %v2062_v27, %v2780_v0 }
 0x163   :  { %v1135_v40 = vadd.f32 %v2065_v41, %v2782_v12 }
 0x164   :  { %1513 = vrot.lane.b32.xlu1 %v2814_v15, %s2340_s29  ;;  %1443 = vrot.lane.b32.xlu0 %v2811_v1, %s2338_s0 }
 0x165   :  { %v2066_v42 = vpop.f32.mrb[56].mxu1  ;;  %v2146_v19 = vpop.f32.mrb[56].mxu0 }
 0x166   :  { %v2856_v25 = vadd.f32 %v2146_v19, %v2785_v16  ;;  %v2067_v45 = vpop.f32.mrb[57].mxu1  ;;  %v1252_v47 = vpop.f32.mrb[57].mxu0 }
 0x167   :  { %v2068_v48 = vadd.f32 %v2067_v45, %v2066_v42  ;;  %v2859_v24 = vadd.f32 %v1252_v47, %v2776_v58  ;;  %v2069_v0 = vpop.f32.mrb[58].mxu1  ;;  %v2147_v50 = vpop.f32.mrb[58].mxu0 }
 0x168   :  { %v2862_v12 = vadd.f32 %v2147_v50, %v2787_v43  ;;  %v2070_v53 = vpop.f32.mrb[59].mxu1  ;;  %v1255_v56 = vpop.f32.mrb[59].mxu0  ;;  %1445 = vrot.lane.b32.xlu1 %v2821_v39, %s2338_s0  ;;  %1507 = vrot.lane.b32.xlu0 %v2811_v1, %s2340_s29 }
 0x169   :  { %v2071_v16 = vadd.f32 %v2070_v53, %v2069_v0  ;;  %v2869_v20 = vadd.f32 %v1255_v56, %v2778_v31  ;;  %v1140_v58 = vadd.f32 %v2068_v48, %v2789_v7 }
 0x16b   :  { %v1143_v60 = vadd.f32 %v2071_v16, %v2791_v34 }
 0x16c   :  { %1509 = vrot.lane.b32.xlu1 %v2821_v39, %s2340_s29  ;;  %1349 = vrot.lane.b32.xlu0 %v2821_v39, %s2339_s28 }
 0x16d   :  { %v2072_v43 = vpop.f32.mrb[60].mxu1  ;;  %v2150_v63 = vpop.f32.mrb[60].mxu0 }
 0x16e   :  { %v2878_v4 = vadd.f32 %v2150_v63, %v2803_v37  ;;  %v2073_v59 = vpop.f32.mrb[61].mxu1  ;;  %v1268_v8 = vpop.f32.mrb[61].mxu0 }
 0x16f   :  { %v2074_v10 = vadd.f32 %v2073_v59, %v2072_v43  ;;  %v2881_v31 = vadd.f32 %v1268_v8, %v2794_v36  ;;  %v2075_v7 = vpop.f32.mrb[62].mxu1  ;;  %v2151_v29 = vpop.f32.mrb[62].mxu0 }
 0x170   :  { %v2884_v34 = vadd.f32 %v2151_v29, %v2805_v11  ;;  %v2076_v49 = vpop.f32.mrb[63].mxu1  ;;  %v1271_v5 = vpop.f32.mrb[63].mxu0  ;;  %1361 = vrot.lane.b32.xlu1 %v2840_v30, %s2339_s28  ;;  %1359 = vrot.lane.b32.xlu0 %v2834_v22, %s2339_s28 }
 0x171   :  { %v2077_v37 = vadd.f32 %v2076_v49, %v2075_v7  ;;  %v2891_v17 = vadd.f32 %v1271_v5, %v2796_v57  ;;  %v1148_v36 = vadd.f32 %v2074_v10, %v2798_v44 }
 0x173   :  { %v1151_v18 = vadd.f32 %v2077_v37, %v2800_v54 }
 0x174   :  { %1457 = vrot.lane.b32.xlu1 %v2840_v30, %s2338_s0  ;;  %1455 = vrot.lane.b32.xlu0 %v2834_v22, %s2338_s0 }
 0x175   :  { %v2078_v11 = vpop.f32.mrb[64].mxu1  ;;  %v2154_v52 = vpop.f32.mrb[64].mxu0 }
 0x176   :  { %v2899_v13 = vadd.f32 %v2154_v52, %v1132_v23  ;;  %v2079_v27 = vpop.f32.mrb[65].mxu1  ;;  %v1284_v55 = vpop.f32.mrb[65].mxu0 }
 0x177   :  { %v2080_v28 = vadd.f32 %v2079_v27, %v2078_v11  ;;  %v2902_v57 = vadd.f32 %v1284_v55, %v2824_v51  ;;  %v2081_v32 = vpop.f32.mrb[66].mxu1  ;;  %v2155_v44 = vpop.f32.mrb[66].mxu0 }
 0x178   :  { %v2904_v35 = vadd.f32 %v2155_v44, %v1135_v40  ;;  %v2082_v54 = vpop.f32.mrb[67].mxu1  ;;  %v1287_v41 = vpop.f32.mrb[67].mxu0  ;;  %1521 = vrot.lane.b32.xlu1 %v2840_v30, %s2340_s29  ;;  %1519 = vrot.lane.b32.xlu0 %v2834_v22, %s2340_s29 }
 0x179   :  { %v2083_v23 = vadd.f32 %v2082_v54, %v2081_v32  ;;  %v2911_v42 = vadd.f32 %v1287_v41, %v2827_v6  ;;  %v1156_v19 = vadd.f32 %v2080_v28, %v2731_v61 }
 0x17b   :  { %v1159_v51 = vadd.f32 %v2083_v23, %v2733_v2 }
 0x17c   :  { %1357 = vrot.lane.b32.xlu1 %v2847_v3, %s2339_s28  ;;  %1355 = vrot.lane.b32.xlu0 %v2837_v46, %s2339_s28 }
 0x17d   :  { %v2084_v40 = vpop.f32.mrb[68].mxu1  ;;  %v2158_v45 = vpop.f32.mrb[68].mxu0 }
 0x17e   :  { %v2919_v47 = vadd.f32 %v2158_v45, %v1148_v36  ;;  %v2085_v48 = vpop.f32.mrb[69].mxu1  ;;  %v1300_v0 = vpop.f32.mrb[69].mxu0 }
 0x17f   :  { %v2086_v50 = vadd.f32 %v2085_v48, %v2084_v40  ;;  %v2921_v53 = vadd.f32 %v1300_v0, %v1140_v58  ;;  %v2087_v6 = vpop.f32.mrb[70].mxu1  ;;  %v2159_v56 = vpop.f32.mrb[70].mxu0 }
 0x180   :  { %v2923_v61 = vadd.f32 %v2159_v56, %v1151_v18  ;;  %v2088_v2 = vpop.f32.mrb[71].mxu1  ;;  %v1303_v16 = vpop.f32.mrb[71].mxu0  ;;  %1453 = vrot.lane.b32.xlu1 %v2847_v3, %s2338_s0  ;;  %1451 = vrot.lane.b32.xlu0 %v2837_v46, %s2338_s0 }
 0x181   :  { %v2089_v43 = vadd.f32 %v2088_v2, %v2087_v6  ;;  %v2929_v63 = vadd.f32 %v1303_v16, %v1143_v60  ;;  %v1164_v59 = vadd.f32 %v2086_v50, %v2735_v9 }
 0x183   :  { %v1167_v58 = vadd.f32 %v2089_v43, %v2737_v14 }
 0x184   :  { %1517 = vrot.lane.b32.xlu1 %v2847_v3, %s2340_s29  ;;  %1515 = vrot.lane.b32.xlu0 %v2837_v46, %s2340_s29 }
 0x185   :  { %v2090_v8 = vpop.f32.mrb[72].mxu1  ;;  %v2162_v10 = vpop.f32.mrb[72].mxu0 }
 0x186   :  { %v2937_v7 = vadd.f32 %v2162_v10, %v1164_v59  ;;  %v2091_v29 = vpop.f32.mrb[73].mxu1  ;;  %v1316_v49 = vpop.f32.mrb[73].mxu0  ;;  %v3033_v59 = vld [vmem:[%s3300_s2] ss:$0 sm:$0xff] }
 0x187   :  { %v2092_v5 = vadd.f32 %v2091_v29, %v2090_v8  ;;  %v2939_v37 = vadd.f32 %v1316_v49, %v1156_v19  ;;  %v2093_v60 = vpop.f32.mrb[74].mxu1  ;;  %v2163_v36 = vpop.f32.mrb[74].mxu0 }
 0x188   :  { %v2941_v9 = vadd.f32 %v2163_v36, %v1167_v58  ;;  %v2094_v14 = vpop.f32.mrb[75].mxu1  ;;  %v1319_v18 = vpop.f32.mrb[75].mxu0  ;;  %1369 = vrot.lane.b32.xlu1 %v2862_v12, %s2339_s28  ;;  %1367 = vrot.lane.b32.xlu0 %v2856_v25, %s2339_s28 }
 0x189   :  { %v2095_v11 = vadd.f32 %v2094_v14, %v2093_v60  ;;  %v2947_v52 = vadd.f32 %v1319_v18, %v1159_v51  ;;  %v1172_v27 = vadd.f32 %v2092_v5, %v2739_v21 }
 0x18b   :  { %v1175_v55 = vadd.f32 %v2095_v11, %v2741_v26 }
 0x18c   :  { %1465 = vrot.lane.b32.xlu1 %v2862_v12, %s2338_s0  ;;  %1463 = vrot.lane.b32.xlu0 %v2856_v25, %s2338_s0 }
 0x18d   :  { %v2096_v28 = vpop.f32.mrb[76].mxu1  ;;  %v2166_v32 = vpop.f32.mrb[76].mxu0 }
 0x18e   :  { %v2097_v44 = vpop.f32.mrb[77].mxu1  ;;  %v1332_v54 = vpop.f32.mrb[77].mxu0 }
 0x18f   :  { %v2098_v41 = vadd.f32 %v2097_v44, %v2096_v28  ;;  %v2955_v23 = vadd.f32 %v1332_v54, %v1172_v27  ;;  %v2099_v19 = vpop.f32.mrb[78].mxu1  ;;  %v2167_v51 = vpop.f32.mrb[78].mxu0 }
 0x190   :  { %v2100_v40 = vpop.f32.mrb[79].mxu1  ;;  %v1335_v45 = vpop.f32.mrb[79].mxu0  ;;  %1529 = vrot.lane.b32.xlu1 %v2862_v12, %s2340_s29  ;;  %1527 = vrot.lane.b32.xlu0 %v2856_v25, %s2340_s29 }
 0x191   :  { %v1180_v21 = vadd.f32 %v2098_v41, %v2743_v33  ;;  %v2101_v26 = vadd.f32 %v2100_v40, %v2099_v19  ;;  %v2962_v48 = vadd.f32 %v1335_v45, %v1175_v55 }
 0x193   :  { %v2964_v0 = vadd.f32 %v2166_v32, %v1180_v21  ;;  %v1183_v50 = vadd.f32 %v2101_v26, %v2745_v38 }
 0x194   :  { %1365 = vrot.lane.b32.xlu1 %v2869_v20, %s2339_s28  ;;  %1363 = vrot.lane.b32.xlu0 %v2859_v24, %s2339_s28 }
 0x195   :  { %v2971_v6 = vadd.f32 %v2167_v51, %v1183_v50 }
 0x198   :  { %1461 = vrot.lane.b32.xlu1 %v2869_v20, %s2338_s0  ;;  %1459 = vrot.lane.b32.xlu0 %v2859_v24, %s2338_s0 }
 0x19c   :  { %1525 = vrot.lane.b32.xlu1 %v2869_v20, %s2340_s29  ;;  %1523 = vrot.lane.b32.xlu0 %v2859_v24, %s2340_s29 }
 0x1a0   :  { %1377 = vrot.lane.b32.xlu1 %v2884_v34, %s2339_s28  ;;  %1375 = vrot.lane.b32.xlu0 %v2878_v4, %s2339_s28 }
 0x1a4   :  { %1473 = vrot.lane.b32.xlu1 %v2884_v34, %s2338_s0  ;;  %1471 = vrot.lane.b32.xlu0 %v2878_v4, %s2338_s0 }
 0x1a8   :  { %1537 = vrot.lane.b32.xlu1 %v2884_v34, %s2340_s29  ;;  %1535 = vrot.lane.b32.xlu0 %v2878_v4, %s2340_s29 }
 0x1ac   :  { %1373 = vrot.lane.b32.xlu1 %v2891_v17, %s2339_s28  ;;  %1371 = vrot.lane.b32.xlu0 %v2881_v31, %s2339_s28 }
 0x1b0   :  { %1469 = vrot.lane.b32.xlu1 %v2891_v17, %s2338_s0  ;;  %1467 = vrot.lane.b32.xlu0 %v2881_v31, %s2338_s0 }
 0x1b4   :  { %1533 = vrot.lane.b32.xlu1 %v2891_v17, %s2340_s29  ;;  %1531 = vrot.lane.b32.xlu0 %v2881_v31, %s2340_s29 }
 0x1b8   :  { %1385 = vrot.lane.b32.xlu1 %v2904_v35, %s2339_s28  ;;  %1383 = vrot.lane.b32.xlu0 %v2899_v13, %s2339_s28 }
 0x1bc   :  { %1481 = vrot.lane.b32.xlu1 %v2904_v35, %s2338_s0  ;;  %1479 = vrot.lane.b32.xlu0 %v2899_v13, %s2338_s0 }
 0x1c0   :  { %1545 = vrot.lane.b32.xlu1 %v2904_v35, %s2340_s29  ;;  %1543 = vrot.lane.b32.xlu0 %v2899_v13, %s2340_s29 }
 0x1c4   :  { %1381 = vrot.lane.b32.xlu1 %v2911_v42, %s2339_s28  ;;  %1379 = vrot.lane.b32.xlu0 %v2902_v57, %s2339_s28 }
 0x1c8   :  { %1477 = vrot.lane.b32.xlu1 %v2911_v42, %s2338_s0  ;;  %1475 = vrot.lane.b32.xlu0 %v2902_v57, %s2338_s0 }
 0x1ca   :  { %v1448_v33 = vpop.permute.xlu0 %1447  ;;  %v1352_v38 = vpop.permute.xlu1 %1351 }
 0x1cb   :  { %v1413_v16 = vmax.f32 %v2808_v62, %v1352_v38 }
 0x1cc   :  { %1541 = vrot.lane.b32.xlu1 %v2911_v42, %s2340_s29  ;;  %1539 = vrot.lane.b32.xlu0 %v2902_v57, %s2340_s29 }
 0x1ce   :  { %v1512_v56 = vpop.permute.xlu0 %1511  ;;  %v1354_v2 = vpop.permute.xlu1 %1353 }
 0x1cf   :  { %v1573_v43 = vmax.f32 %v1448_v33, %v1512_v56  ;;  %v1414_v60 = vmax.f32 %v2814_v15, %v1354_v2 }
 0x1d0   :  { %1393 = vrot.lane.b32.xlu1 %v2923_v61, %s2339_s28  ;;  %1391 = vrot.lane.b32.xlu0 %v2919_v47, %s2339_s28 }
 0x1d1   :  { %v1605_v58 = vmax.f32 %v1413_v16, %v1573_v43 }
 0x1d2   :  { %v1450_v8 = vpop.permute.xlu1 %1449  ;;  %v1348_v10 = vpop.permute.xlu0 %1347 }
 0x1d3   :  { %v1644_v29 = vadd.f32 %v3033_v59, %v1605_v58  ;;  %v1411_v27 = vmax.f32 %v2811_v1, %v1348_v10 }
 0x1d4   :  { %1489 = vrot.lane.b32.xlu1 %v2923_v61, %s2338_s0  ;;  %1487 = vrot.lane.b32.xlu0 %v2919_v47, %s2338_s0 }
 0x1d5   :  { %v1676_v62 = vmax.f32 %v1644_v29, 0.0 }
 0x1d6   :  { %v1514_v49 = vpop.permute.xlu1 %1513  ;;  %v1444_v5 = vpop.permute.xlu0 %1443 }
 0x1d7   :  { %1709 = vst.msk [vmem:[%s3301_s3 + $0x10] sm:$0xff] %vm1706_vm2, %v1676_v62  ;;  %v1574_v36 = vmax.f32 %v1450_v8, %v1514_v49 }
 0x1d8   :  { %1553 = vrot.lane.b32.xlu1 %v2923_v61, %s2340_s29  ;;  %1551 = vrot.lane.b32.xlu0 %v2919_v47, %s2340_s29 }
 0x1d9   :  { %v1606_v14 = vmax.f32 %v1414_v60, %v1574_v36 }
 0x1da   :  { %v1446_v18 = vpop.permute.xlu1 %1445  ;;  %v1508_v11 = vpop.permute.xlu0 %1507 }
 0x1db   :  { %v1645_v55 = vadd.f32 %v3033_v59, %v1606_v14  ;;  %v1571_v28 = vmax.f32 %v1444_v5, %v1508_v11 }
 0x1dc   :  { %1389 = vrot.lane.b32.xlu1 %v2929_v63, %s2339_s28  ;;  %1387 = vrot.lane.b32.xlu0 %v2921_v53, %s2339_s28 }
 0x1dd   :  { %v1677_v15 = vmax.f32 %v1645_v55, 0.0  ;;  %v1603_v32 = vmax.f32 %v1411_v27, %v1571_v28 }
 0x1de   :  { %v1510_v44 = vpop.permute.xlu1 %1509  ;;  %v1350_v54 = vpop.permute.xlu0 %1349 }
 0x1df   :  { %1710 = vst.msk [vmem:[%s3301_s3 + $0x18] sm:$0xff] %vm1706_vm2, %v1677_v15  ;;  %v1642_v1 = vadd.f32 %v3033_v59, %v1603_v32  ;;  %v1572_v41 = vmax.f32 %v1446_v18, %v1510_v44  ;;  %v1412_v19 = vmax.f32 %v2821_v39, %v1350_v54 }
 0x1e0   :  { %1485 = vrot.lane.b32.xlu1 %v2929_v63, %s2338_s0  ;;  %1483 = vrot.lane.b32.xlu0 %v2921_v53, %s2338_s0 }
 0x1e1   :  { %v1674_v51 = vmax.f32 %v1642_v1, 0.0  ;;  %v1604_v40 = vmax.f32 %v1412_v19, %v1572_v41 }
 0x1e2   :  { %v1362_v45 = vpop.permute.xlu1 %1361  ;;  %v1360_v21 = vpop.permute.xlu0 %1359 }
 0x1e3   :  { %1707 = vst.msk [vmem:[%s3301_s3] sm:$0xff] %vm1706_vm2, %v1674_v51  ;;  %v1643_v26 = vadd.f32 %v3033_v59, %v1604_v40  ;;  %v1418_v2 = vmax.f32 %v2840_v30, %v1362_v45  ;;  %v1417_v16 = vmax.f32 %v2834_v22, %v1360_v21 }
 0x1e4   :  { %1549 = vrot.lane.b32.xlu1 %v2929_v63, %s2340_s29  ;;  %1547 = vrot.lane.b32.xlu0 %v2921_v53, %s2340_s29 }
 0x1e5   :  { %v1675_v39 = vmax.f32 %v1643_v26, 0.0 }
 0x1e6   :  { %v1458_v50 = vpop.permute.xlu1 %1457  ;;  %v1456_v33 = vpop.permute.xlu0 %1455 }
 0x1e7   :  { %1708 = vst.msk [vmem:[%s3301_s3 + $0x8] sm:$0xff] %vm1706_vm2, %v1675_v39 }
 0x1e8   :  { %1401 = vrot.lane.b32.xlu1 %v2941_v9, %s2339_s28  ;;  %1399 = vrot.lane.b32.xlu0 %v2937_v7, %s2339_s28 }
 0x1ea   :  { %v1522_v38 = vpop.permute.xlu1 %1521  ;;  %v1520_v56 = vpop.permute.xlu0 %1519 }
 0x1eb   :  { %v1578_v43 = vmax.f32 %v1458_v50, %v1522_v38  ;;  %v1577_v58 = vmax.f32 %v1456_v33, %v1520_v56 }
 0x1ec   :  { %1497 = vrot.lane.b32.xlu1 %v2941_v9, %s2338_s0  ;;  %1495 = vrot.lane.b32.xlu0 %v2937_v7, %s2338_s0 }
 0x1ed   :  { %v1610_v8 = vmax.f32 %v1418_v2, %v1578_v43  ;;  %v1609_v10 = vmax.f32 %v1417_v16, %v1577_v58 }
 0x1ee   :  { %v1358_v29 = vpop.permute.xlu1 %1357  ;;  %v1356_v62 = vpop.permute.xlu0 %1355 }
 0x1ef   :  { %v1649_v49 = vadd.f32 %v3033_v59, %v1610_v8  ;;  %v1648_v5 = vadd.f32 %v3033_v59, %v1609_v10  ;;  %v1416_v11 = vmax.f32 %v2847_v3, %v1358_v29  ;;  %v1415_v27 = vmax.f32 %v2837_v46, %v1356_v62 }
 0x1f0   :  { %1561 = vrot.lane.b32.xlu1 %v2941_v9, %s2340_s29  ;;  %1559 = vrot.lane.b32.xlu0 %v2937_v7, %s2340_s29 }
 0x1f1   :  { %v1681_v22 = vmax.f32 %v1649_v49, 0.0  ;;  %v1680_v30 = vmax.f32 %v1648_v5, 0.0 }
 0x1f2   :  { %v1454_v60 = vpop.permute.xlu1 %1453  ;;  %v1452_v36 = vpop.permute.xlu0 %1451 }
 0x1f3   :  { %1714 = vst.msk [vmem:[%s3301_s3 + $0x38] sm:$0xff] %vm1706_vm2, %v1681_v22  ;;  %1713 = vst.msk [vmem:[%s3301_s3 + $0x30] sm:$0xff] %vm1706_vm2, %v1680_v30 }
 0x1f4   :  { %1397 = vrot.lane.b32.xlu1 %v2947_v52, %s2339_s28  ;;  %1395 = vrot.lane.b32.xlu0 %v2939_v37, %s2339_s28 }
 0x1f6   :  { %v1518_v14 = vpop.permute.xlu1 %1517  ;;  %v1516_v18 = vpop.permute.xlu0 %1515 }
 0x1f7   :  { %v1576_v55 = vmax.f32 %v1454_v60, %v1518_v14  ;;  %v1575_v28 = vmax.f32 %v1452_v36, %v1516_v18 }
 0x1f8   :  { %1493 = vrot.lane.b32.xlu1 %v2947_v52, %s2338_s0  ;;  %1491 = vrot.lane.b32.xlu0 %v2939_v37, %s2338_s0 }
 0x1f9   :  { %v1608_v15 = vmax.f32 %v1416_v11, %v1576_v55  ;;  %v1607_v32 = vmax.f32 %v1415_v27, %v1575_v28 }
 0x1fa   :  { %v1370_v44 = vpop.permute.xlu1 %1369  ;;  %v1368_v54 = vpop.permute.xlu0 %1367 }
 0x1fb   :  { %v1647_v1 = vadd.f32 %v3033_v59, %v1608_v15  ;;  %v1646_v41 = vadd.f32 %v3033_v59, %v1607_v32  ;;  %v1422_v21 = vmax.f32 %v2862_v12, %v1370_v44  ;;  %v1421_v26 = vmax.f32 %v2856_v25, %v1368_v54 }
 0x1fc   :  { %1557 = vrot.lane.b32.xlu1 %v2947_v52, %s2340_s29  ;;  %1555 = vrot.lane.b32.xlu0 %v2939_v37, %s2340_s29 }
 0x1fd   :  { %v1679_v46 = vmax.f32 %v1647_v1, 0.0  ;;  %v1678_v3 = vmax.f32 %v1646_v41, 0.0 }
 0x1fe   :  { %v1466_v19 = vpop.permute.xlu1 %1465  ;;  %v1464_v51 = vpop.permute.xlu0 %1463 }
 0x1ff   :  { %1712 = vst.msk [vmem:[%s3301_s3 + $0x28] sm:$0xff] %vm1706_vm2, %v1679_v46  ;;  %1711 = vst.msk [vmem:[%s3301_s3 + $0x20] sm:$0xff] %vm1706_vm2, %v1678_v3 }
 0x200   :  { %1405 = vrot.lane.b32.xlu1 %v2962_v48, %s2339_s28  ;;  %1403 = vrot.lane.b32.xlu0 %v2955_v23, %s2339_s28 }
 0x202   :  { %v1530_v40 = vpop.permute.xlu1 %1529  ;;  %v1528_v45 = vpop.permute.xlu0 %1527 }
 0x203   :  { %v1582_v39 = vmax.f32 %v1466_v19, %v1530_v40  ;;  %v1581_v50 = vmax.f32 %v1464_v51, %v1528_v45 }
 0x204   :  { %1501 = vrot.lane.b32.xlu1 %v2962_v48, %s2338_s0  ;;  %1499 = vrot.lane.b32.xlu0 %v2955_v23, %s2338_s0 }
 0x205   :  { %v1614_v33 = vmax.f32 %v1422_v21, %v1582_v39  ;;  %v1613_v38 = vmax.f32 %v1421_v26, %v1581_v50 }
 0x206   :  { %v1366_v56 = vpop.permute.xlu1 %1365  ;;  %v1364_v2 = vpop.permute.xlu0 %1363 }
 0x207   :  { %v1653_v16 = vadd.f32 %v3033_v59, %v1614_v33  ;;  %v1652_v43 = vadd.f32 %v3033_v59, %v1613_v38  ;;  %v1420_v62 = vmax.f32 %v2869_v20, %v1366_v56  ;;  %v1419_v49 = vmax.f32 %v2859_v24, %v1364_v2 }
 0x208   :  { %1565 = vrot.lane.b32.xlu1 %v2962_v48, %s2340_s29  ;;  %1563 = vrot.lane.b32.xlu0 %v2955_v23, %s2340_s29 }
 0x209   :  { %v1685_v25 = vmax.f32 %v1653_v16, 0.0  ;;  %v1684_v12 = vmax.f32 %v1652_v43, 0.0 }
 0x20a   :  { %v1462_v58 = vpop.permute.xlu1 %1461  ;;  %v1460_v8 = vpop.permute.xlu0 %1459 }
 0x20b   :  { %1718 = vst.msk [vmem:[%s3301_s3 + $0x58] sm:$0xff] %vm1706_vm2, %v1685_v25  ;;  %1717 = vst.msk [vmem:[%s3301_s3 + $0x50] sm:$0xff] %vm1706_vm2, %v1684_v12 }
 0x20c   :  { %1409 = vrot.lane.b32.xlu1 %v2971_v6, %s2339_s28  ;;  %1407 = vrot.lane.b32.xlu0 %v2964_v0, %s2339_s28 }
 0x20e   :  { %v1526_v10 = vpop.permute.xlu1 %1525  ;;  %v1524_v29 = vpop.permute.xlu0 %1523 }
 0x20f   :  { %v1580_v5 = vmax.f32 %v1462_v58, %v1526_v10  ;;  %v1579_v22 = vmax.f32 %v1460_v8, %v1524_v29 }
 0x210   :  { %1505 = vrot.lane.b32.xlu1 %v2971_v6, %s2338_s0  ;;  %1503 = vrot.lane.b32.xlu0 %v2964_v0, %s2338_s0 }
 0x211   :  { %v1612_v30 = vmax.f32 %v1420_v62, %v1580_v5  ;;  %v1611_v60 = vmax.f32 %v1419_v49, %v1579_v22 }
 0x212   :  { %v1378_v36 = vpop.permute.xlu1 %1377  ;;  %v1376_v14 = vpop.permute.xlu0 %1375 }
 0x213   :  { %v1651_v18 = vadd.f32 %v3033_v59, %v1612_v30  ;;  %v1650_v11 = vadd.f32 %v3033_v59, %v1611_v60  ;;  %v1426_v32 = vmax.f32 %v2884_v34, %v1378_v36  ;;  %v1425_v44 = vmax.f32 %v2878_v4, %v1376_v14 }
 0x214   :  { %1569 = vrot.lane.b32.xlu1 %v2971_v6, %s2340_s29  ;;  %1567 = vrot.lane.b32.xlu0 %v2964_v0, %s2340_s29 }
 0x215   :  { %v1683_v24 = vmax.f32 %v1651_v18, 0.0  ;;  %v1682_v20 = vmax.f32 %v1650_v11, 0.0 }
 0x216   :  { %v1474_v27 = vpop.permute.xlu1 %1473  ;;  %v1472_v55 = vpop.permute.xlu0 %1471 }
 0x217   :  { %1716 = vst.msk [vmem:[%s3301_s3 + $0x48] sm:$0xff] %vm1706_vm2, %v1683_v24  ;;  %1715 = vst.msk [vmem:[%s3301_s3 + $0x40] sm:$0xff] %vm1706_vm2, %v1682_v20 }
 0x21a   :  { %v1538_v28 = vpop.permute.xlu1 %1537  ;;  %v1536_v15 = vpop.permute.xlu0 %1535 }
 0x21b   :  { %v1586_v54 = vmax.f32 %v1474_v27, %v1538_v28  ;;  %v1585_v1 = vmax.f32 %v1472_v55, %v1536_v15 }
 0x21d   :  { %v1618_v41 = vmax.f32 %v1426_v32, %v1586_v54  ;;  %v1617_v46 = vmax.f32 %v1425_v44, %v1585_v1 }
 0x21e   :  { %v1374_v3 = vpop.permute.xlu1 %1373  ;;  %v1372_v19 = vpop.permute.xlu0 %1371 }
 0x21f   :  { %v1657_v51 = vadd.f32 %v3033_v59, %v1618_v41  ;;  %v1656_v40 = vadd.f32 %v3033_v59, %v1617_v46  ;;  %v1424_v50 = vmax.f32 %v2891_v17, %v1374_v3  ;;  %v1423_v33 = vmax.f32 %v2881_v31, %v1372_v19 }
 0x221   :  { %v1689_v45 = vmax.f32 %v1657_v51, 0.0  ;;  %v1688_v21 = vmax.f32 %v1656_v40, 0.0 }
 0x222   :  { %v1470_v26 = vpop.permute.xlu1 %1469  ;;  %v1468_v39 = vpop.permute.xlu0 %1467 }
 0x223   :  { %1722 = vst.msk [vmem:[%s3301_s3 + $0x78] sm:$0xff] %vm1706_vm2, %v1689_v45  ;;  %1721 = vst.msk [vmem:[%s3301_s3 + $0x70] sm:$0xff] %vm1706_vm2, %v1688_v21 }
 0x226   :  { %v1534_v4 = vpop.permute.xlu1 %1533  ;;  %v1532_v34 = vpop.permute.xlu0 %1531 }
 0x227   :  { %v1584_v38 = vmax.f32 %v1470_v26, %v1534_v4  ;;  %v1583_v56 = vmax.f32 %v1468_v39, %v1532_v34 }
 0x229   :  { %v1616_v2 = vmax.f32 %v1424_v50, %v1584_v38  ;;  %v1615_v16 = vmax.f32 %v1423_v33, %v1583_v56 }
 0x22a   :  { %v1386_v43 = vpop.permute.xlu1 %1385  ;;  %v1384_v25 = vpop.permute.xlu0 %1383 }
 0x22b   :  { %v1655_v12 = vadd.f32 %v3033_v59, %v1616_v2  ;;  %v1654_v58 = vadd.f32 %v3033_v59, %v1615_v16  ;;  %v1430_v49 = vmax.f32 %v2904_v35, %v1386_v43  ;;  %v1429_v5 = vmax.f32 %v2899_v13, %v1384_v25 }
 0x22d   :  { %v1687_v8 = vmax.f32 %v1655_v12, 0.0  ;;  %v1686_v10 = vmax.f32 %v1654_v58, 0.0 }
 0x22e   :  { %v1482_v29 = vpop.permute.xlu1 %1481  ;;  %v1480_v62 = vpop.permute.xlu0 %1479 }
 0x22f   :  { %1720 = vst.msk [vmem:[%s3301_s3 + $0x68] sm:$0xff] %vm1706_vm2, %v1687_v8  ;;  %1719 = vst.msk [vmem:[%s3301_s3 + $0x60] sm:$0xff] %vm1706_vm2, %v1686_v10 }
 0x232   :  { %v1546_v31 = vpop.permute.xlu1 %1545  ;;  %v1544_v17 = vpop.permute.xlu0 %1543 }
 0x233   :  { %v1590_v22 = vmax.f32 %v1482_v29, %v1546_v31  ;;  %v1589_v30 = vmax.f32 %v1480_v62, %v1544_v17 }
 0x235   :  { %v1622_v60 = vmax.f32 %v1430_v49, %v1590_v22  ;;  %v1621_v36 = vmax.f32 %v1429_v5, %v1589_v30 }
 0x236   :  { %v1382_v14 = vpop.permute.xlu1 %1381  ;;  %v1380_v18 = vpop.permute.xlu0 %1379 }
 0x237   :  { %v1661_v11 = vadd.f32 %v3033_v59, %v1622_v60  ;;  %v1660_v24 = vadd.f32 %v3033_v59, %v1621_v36  ;;  %v1428_v15 = vmax.f32 %v2911_v42, %v1382_v14  ;;  %v1427_v32 = vmax.f32 %v2902_v57, %v1380_v18 }
 0x239   :  { %v1693_v20 = vmax.f32 %v1661_v11, 0.0  ;;  %v1692_v27 = vmax.f32 %v1660_v24, 0.0 }
 0x23a   :  { %v1478_v55 = vpop.permute.xlu1 %1477  ;;  %v1476_v28 = vpop.permute.xlu0 %1475 }
 0x23b   :  { %1726 = vst.msk [vmem:[%s3301_s3 + $0x98] sm:$0xff] %vm1706_vm2, %v1693_v20  ;;  %1725 = vst.msk [vmem:[%s3301_s3 + $0x90] sm:$0xff] %vm1706_vm2, %v1692_v27 }
 0x23e   :  { %v1542_v13 = vpop.permute.xlu1 %1541  ;;  %v1540_v35 = vpop.permute.xlu0 %1539 }
 0x23f   :  { %v1588_v44 = vmax.f32 %v1478_v55, %v1542_v13  ;;  %v1587_v54 = vmax.f32 %v1476_v28, %v1540_v35 }
 0x241   :  { %v1620_v1 = vmax.f32 %v1428_v15, %v1588_v44  ;;  %v1619_v41 = vmax.f32 %v1427_v32, %v1587_v54 }
 0x242   :  { %v1394_v46 = vpop.permute.xlu1 %1393  ;;  %v1392_v3 = vpop.permute.xlu0 %1391 }
 0x243   :  { %v1659_v19 = vadd.f32 %v3033_v59, %v1620_v1  ;;  %v1658_v51 = vadd.f32 %v3033_v59, %v1619_v41  ;;  %v1434_v39 = vmax.f32 %v2923_v61, %v1394_v46  ;;  %v1433_v4 = vmax.f32 %v2919_v47, %v1392_v3 }
 0x245   :  { %v1691_v40 = vmax.f32 %v1659_v19, 0.0  ;;  %v1690_v45 = vmax.f32 %v1658_v51, 0.0 }
 0x246   :  { %v1490_v21 = vpop.permute.xlu1 %1489  ;;  %v1488_v26 = vpop.permute.xlu0 %1487 }
 0x247   :  { %1724 = vst.msk [vmem:[%s3301_s3 + $0x88] sm:$0xff] %vm1706_vm2, %v1691_v40  ;;  %1723 = vst.msk [vmem:[%s3301_s3 + $0x80] sm:$0xff] %vm1706_vm2, %v1690_v45 }
 0x24a   :  { %v1554_v57 = vpop.permute.xlu1 %1553  ;;  %v1552_v42 = vpop.permute.xlu0 %1551 }
 0x24b   :  { %v1594_v34 = vmax.f32 %v1490_v21, %v1554_v57  ;;  %v1593_v50 = vmax.f32 %v1488_v26, %v1552_v42 }
 0x24d   :  { %v1626_v33 = vmax.f32 %v1434_v39, %v1594_v34  ;;  %v1625_v38 = vmax.f32 %v1433_v4, %v1593_v50 }
 0x24e   :  { %v1390_v56 = vpop.permute.xlu1 %1389  ;;  %v1388_v2 = vpop.permute.xlu0 %1387 }
 0x24f   :  { %v1665_v16 = vadd.f32 %v3033_v59, %v1626_v33  ;;  %v1664_v43 = vadd.f32 %v3033_v59, %v1625_v38  ;;  %v1432_v10 = vmax.f32 %v2929_v63, %v1390_v56  ;;  %v1431_v29 = vmax.f32 %v2921_v53, %v1388_v2 }
 0x251   :  { %v1697_v25 = vmax.f32 %v1665_v16, 0.0  ;;  %v1696_v12 = vmax.f32 %v1664_v43, 0.0 }
 0x252   :  { %v1486_v58 = vpop.permute.xlu1 %1485  ;;  %v1484_v8 = vpop.permute.xlu0 %1483 }
 0x253   :  { %1730 = vst.msk [vmem:[%s3301_s3 + $0xb8] sm:$0xff] %vm1706_vm2, %v1697_v25  ;;  %1729 = vst.msk [vmem:[%s3301_s3 + $0xb0] sm:$0xff] %vm1706_vm2, %v1696_v12 }
 0x256   :  { %v1550_v47 = vpop.permute.xlu1 %1549  ;;  %v1548_v61 = vpop.permute.xlu0 %1547 }
 0x257   :  { %v1592_v62 = vmax.f32 %v1486_v58, %v1550_v47  ;;  %v1591_v31 = vmax.f32 %v1484_v8, %v1548_v61 }
 0x259   :  { %v1624_v17 = vmax.f32 %v1432_v10, %v1592_v62  ;;  %v1623_v49 = vmax.f32 %v1431_v29, %v1591_v31 }
 0x25a   :  { %v1402_v5 = vpop.permute.xlu1 %1401  ;;  %v1400_v22 = vpop.permute.xlu0 %1399 }
 0x25b   :  { %v1663_v30 = vadd.f32 %v3033_v59, %v1624_v17  ;;  %v1662_v60 = vadd.f32 %v3033_v59, %v1623_v49  ;;  %v1438_v24 = vmax.f32 %v2941_v9, %v1402_v5  ;;  %v1437_v20 = vmax.f32 %v2937_v7, %v1400_v22 }
 0x25d   :  { %v1695_v36 = vmax.f32 %v1663_v30, 0.0  ;;  %v1694_v14 = vmax.f32 %v1662_v60, 0.0 }
 0x25e   :  { %v1498_v18 = vpop.permute.xlu1 %1497  ;;  %v1496_v11 = vpop.permute.xlu0 %1495 }
 0x25f   :  { %1728 = vst.msk [vmem:[%s3301_s3 + $0xa8] sm:$0xff] %vm1706_vm2, %v1695_v36  ;;  %1727 = vst.msk [vmem:[%s3301_s3 + $0xa0] sm:$0xff] %vm1706_vm2, %v1694_v14 }
 0x262   :  { %v1562_v53 = vpop.permute.xlu1 %1561  ;;  %v1560_v63 = vpop.permute.xlu0 %1559 }
 0x263   :  { %v1598_v27 = vmax.f32 %v1498_v18, %v1562_v53  ;;  %v1597_v55 = vmax.f32 %v1496_v11, %v1560_v63 }
 0x265   :  { %v1630_v28 = vmax.f32 %v1438_v24, %v1598_v27  ;;  %v1629_v13 = vmax.f32 %v1437_v20, %v1597_v55 }
 0x266   :  { %v1398_v35 = vpop.permute.xlu1 %1397  ;;  %v1396_v15 = vpop.permute.xlu0 %1395 }
 0x267   :  { %v1669_v32 = vadd.f32 %v3033_v59, %v1630_v28  ;;  %v1668_v44 = vadd.f32 %v3033_v59, %v1629_v13  ;;  %v1436_v3 = vmax.f32 %v2947_v52, %v1398_v35  ;;  %v1435_v19 = vmax.f32 %v2939_v37, %v1396_v15 }
 0x269   :  { %v1701_v54 = vmax.f32 %v1669_v32, 0.0  ;;  %v1700_v1 = vmax.f32 %v1668_v44, 0.0 }
 0x26a   :  { %v1494_v41 = vpop.permute.xlu1 %1493  ;;  %v1492_v46 = vpop.permute.xlu0 %1491 }
 0x26b   :  { %1734 = vst.msk [vmem:[%s3301_s3 + $0xd8] sm:$0xff] %vm1706_vm2, %v1701_v54  ;;  %1733 = vst.msk [vmem:[%s3301_s3 + $0xd0] sm:$0xff] %vm1706_vm2, %v1700_v1 }
 0x26e   :  { %v1558_v7 = vpop.permute.xlu1 %1557  ;;  %v1556_v9 = vpop.permute.xlu0 %1555 }
 0x26f   :  { %v1596_v51 = vmax.f32 %v1494_v41, %v1558_v7  ;;  %v1595_v40 = vmax.f32 %v1492_v46, %v1556_v9 }
 0x271   :  { %v1628_v45 = vmax.f32 %v1436_v3, %v1596_v51  ;;  %v1627_v21 = vmax.f32 %v1435_v19, %v1595_v40 }
 0x272   :  { %v1406_v26 = vpop.permute.xlu1 %1405  ;;  %v1404_v57 = vpop.permute.xlu0 %1403 }
 0x273   :  { %v1667_v42 = vadd.f32 %v3033_v59, %v1628_v45  ;;  %v1666_v39 = vadd.f32 %v3033_v59, %v1627_v21  ;;  %v1440_v38 = vmax.f32 %v2962_v48, %v1406_v26  ;;  %v1439_v56 = vmax.f32 %v2955_v23, %v1404_v57 }
 0x275   :  { %v1699_v4 = vmax.f32 %v1667_v42, 0.0  ;;  %v1698_v34 = vmax.f32 %v1666_v39, 0.0 }
 0x276   :  { %v1502_v50 = vpop.permute.xlu1 %1501  ;;  %v1500_v33 = vpop.permute.xlu0 %1499 }
 0x277   :  { %1732 = vst.msk [vmem:[%s3301_s3 + $0xc8] sm:$0xff] %vm1706_vm2, %v1699_v4  ;;  %1731 = vst.msk [vmem:[%s3301_s3 + $0xc0] sm:$0xff] %vm1706_vm2, %v1698_v34 }
 0x27a   :  { %v1566_v37 = vpop.permute.xlu1 %1565  ;;  %v1564_v52 = vpop.permute.xlu0 %1563 }
 0x27b   :  { %v1600_v2 = vmax.f32 %v1502_v50, %v1566_v37  ;;  %v1599_v16 = vmax.f32 %v1500_v33, %v1564_v52 }
 0x27d   :  { %v1632_v43 = vmax.f32 %v1440_v38, %v1600_v2  ;;  %v1631_v25 = vmax.f32 %v1439_v56, %v1599_v16 }
 0x27e   :  { %v1410_v12 = vpop.permute.xlu1 %1409  ;;  %v1408_v58 = vpop.permute.xlu0 %1407 }
 0x27f   :  { %v1671_v8 = vadd.f32 %v3033_v59, %v1632_v43  ;;  %v1670_v47 = vadd.f32 %v3033_v59, %v1631_v25  ;;  %v1442_v31 = vmax.f32 %v2971_v6, %v1410_v12  ;;  %v1441_v17 = vmax.f32 %v2964_v0, %v1408_v58 }
 0x281   :  { %v1703_v61 = vmax.f32 %v1671_v8, 0.0  ;;  %v1702_v10 = vmax.f32 %v1670_v47, 0.0 }
 0x282   :  { %v1506_v29 = vpop.permute.xlu1 %1505  ;;  %v1504_v62 = vpop.permute.xlu0 %1503 }
 0x283   :  { %1736 = vst.msk [vmem:[%s3301_s3 + $0xe8] sm:$0xff] %vm1706_vm2, %v1703_v61  ;;  %1735 = vst.msk [vmem:[%s3301_s3 + $0xe0] sm:$0xff] %vm1706_vm2, %v1702_v10 }
 0x286   :  { %v1570_v23 = vpop.permute.xlu1 %1569  ;;  %v1568_v48 = vpop.permute.xlu0 %1567 }
 0x287   :  { %v1602_v49 = vmax.f32 %v1506_v29, %v1570_v23  ;;  %v1601_v5 = vmax.f32 %v1504_v62, %v1568_v48 }
 0x289   :  { %v1634_v22 = vmax.f32 %v1442_v31, %v1602_v49  ;;  %v1633_v30 = vmax.f32 %v1441_v17, %v1601_v5 }
 0x28b   :  { %v1673_v60 = vadd.f32 %v3033_v59, %v1634_v22  ;;  %v1672_v36 = vadd.f32 %v3033_v59, %v1633_v30 }
 0x28d   :  { %v1705_v14 = vmax.f32 %v1673_v60, 0.0  ;;  %v1704_v18 = vmax.f32 %v1672_v36, 0.0 }
 0x28f   :  { %1738 = vst.msk [vmem:[%s3301_s3 + $0xf8] sm:$0xff] %vm1706_vm2, %v1705_v14  ;;  %1737 = vst.msk [vmem:[%s3301_s3 + $0xf0] sm:$0xff] %vm1706_vm2, %v1704_v18 }

// kernel: net_forward.5
= control target key start
LH: loop header
LB: loop body
LE: loop exit
PB: predicated region body
PF: predicated region fallthrough
CT: control target
= control target key end

     0   :  { %v793_v0 = vmov 0   ;;  %vm257_vm0 = vcmask 130048   ;;  %v794_v30 = vmov 0.0   ;;  %vm795_vm1 = vmmov 0   ;;  %s1013_s1 = inlined_call_operand.vmem [shape: bf16[400,128], index: 1, kind: input, shape index: {}]   ;;  %s1014_s0 = inlined_call_operand.vmem [shape: bf16[16,400], index: 0, kind: input, shape index: {}]   ;;  %s1015_s3 = inlined_call_operand.vmem [shape: bf16[128,128], index: 3, kind: input, shape index: {}]   ;;  %s1016_s5 = inlined_call_operand.vmem [shape: bf16[128,128], index: 5, kind: input, shape index: {}]   ;;  %s1017_s2 = inlined_call_operand.vmem [shape: f32[1,128], index: 2, kind: input, shape index: {}]   ;;  %s1018_s4 = inlined_call_operand.vmem [shape: f32[1,128], index: 4, kind: input, shape index: {}]   ;;  %s1019_s6 = inlined_call_operand.vmem [shape: f32[1,128], index: 6, kind: input, shape index: {}]   ;;  %s1020_s7 = inlined_call_operand.vmem [shape: f32[16,128], index: 7, kind: output, shape index: {}]  }
   0x1   :  { %302 = vmatprep.subr.bf16.mxu1 %v793_v0  ;;  %v738_v1 = vld [vmem:[%s1013_s1 + $0x40] sm:$0xff]   ;;  %v741_v4 = vld [vmem:[%s1013_s1 + $0x48] sm:$0xff]   ;;  %v744_v7 = vld [vmem:[%s1013_s1 + $0x50] sm:$0xff]  }
   0x2   :  { %v739_v2 = vld [vmem:[%s1013_s1 + $0x80] sm:$0xff]   ;;  %655 = vmatprep.subr.bf16.mxu0 %v738_v1  ;;  %v742_v5 = vld [vmem:[%s1013_s1 + $0x88] sm:$0xff]   ;;  %v745_v8 = vld [vmem:[%s1013_s1 + $0x90] sm:$0xff]  }
   0x3   :  { %v740_v3 = vld [vmem:[%s1013_s1] sm:$0xff]   ;;  %303 = vmatpush1.bf16.msra.mxu1 %v739_v2  ;;  %v743_v6 = vld [vmem:[%s1013_s1 + $0x8] sm:$0xff]   ;;  %v746_v9 = vld [vmem:[%s1013_s1 + $0x10] sm:$0xff]  }
   0x4   :  { %656 = vmatpush3.bf16.msra.mxu0 %v740_v3  ;;  %304 = vmatprep.subr.bf16.mxu1 %v793_v0  ;;  %v747_v10 = vld [vmem:[%s1013_s1 + $0x58] sm:$0xff]   ;;  %v750_v13 = vld [vmem:[%s1013_s1 + $0x60] sm:$0xff]   ;;  %v753_v16 = vld [vmem:[%s1013_s1 + $0x68] sm:$0xff]  }
   0x5   :  { %657 = vmatprep.subr.bf16.mxu0 %v741_v4  ;;  %v748_v11 = vld [vmem:[%s1013_s1 + $0x98] sm:$0xff]   ;;  %v751_v14 = vld [vmem:[%s1013_s1 + $0xa0] sm:$0xff]   ;;  %v754_v17 = vld [vmem:[%s1013_s1 + $0xa8] sm:$0xff]  }
   0x6   :  { %v749_v12 = vld [vmem:[%s1013_s1 + $0x18] sm:$0xff]   ;;  %v752_v15 = vld [vmem:[%s1013_s1 + $0x20] sm:$0xff]   ;;  %v755_v18 = vld [vmem:[%s1013_s1 + $0x28] sm:$0xff]  }
   0x7   :  { %305 = vmatpush1.bf16.msra.mxu1 %v742_v5  ;;  %v756_v19 = vld [vmem:[%s1013_s1 + $0x70] sm:$0xff]   ;;  %v759_v22 = vld [vmem:[%s1013_s1 + $0x78] sm:$0xff]   ;;  %v765_v28 = vld [vmem:[%s1013_s1 + $0xc0] sm:$0xff]  }
   0x8   :  { %658 = vmatpush3.bf16.msra.mxu0 %v743_v6  ;;  %306 = vmatprep.subr.bf16.mxu1 %v793_v0  ;;  %v757_v20 = vld [vmem:[%s1013_s1 + $0xb0] sm:$0xff]   ;;  %v760_v24 = vld [vmem:[%s1013_s1 + $0xb8] sm:$0xff]   ;;  %v769_v29 = vld [vmem:[%s1015_s3] sm:$0xff]  }
   0x9   :  { %659 = vmatprep.subr.bf16.mxu0 %v744_v7  ;;  %v758_v21 = vld [vmem:[%s1013_s1 + $0x30] sm:$0xff]   ;;  %v768_v25 = vld [vmem:[%s1014_s0 + $0xc] ss:$16 sps:$4 sm:$0xff]   ;;  %v766_v31 = vld [vmem:[%s1014_s0 + $0x8] ss:$16 sps:$4 sm:$0xff]  }
   0xa   :  { %v764_v23 = vld [vmem:[%s1014_s0 + $0x4] ss:$16 sps:$4 sm:$0xff]   ;;  %v761_v26 = vld [vmem:[%s1013_s1 + $0x38] sm:$0xff]   ;;  %636 = vmatprep.mubr.msk.bf16.mxu1 %vm257_vm0, %v768_v25  ;;  %v762_v27 = vld [vmem:[%s1014_s0] ss:$16 sps:$4 sm:$0xff]  }
   0xb   :  { %307 = vmatpush1.bf16.msra.mxu1 %v745_v8  ;;  %293 = vmatprep.mubr.bf16.mxu0 %v764_v23  ;;  %v770_v32 = vld [vmem:[%s1015_s3 + $0x8] sm:$0xff]   ;;  %v771_v33 = vld [vmem:[%s1015_s3 + $0x10] sm:$0xff]   ;;  %v772_v34 = vld [vmem:[%s1015_s3 + $0x18] sm:$0xff]  }
   0xc   :  { %660 = vmatpush3.bf16.msra.mxu0 %v746_v9  ;;  %308 = vmatprep.subr.bf16.mxu1 %v793_v0  ;;  %v773_v35 = vld [vmem:[%s1015_s3 + $0x20] sm:$0xff]   ;;  %v774_v36 = vld [vmem:[%s1015_s3 + $0x28] sm:$0xff]   ;;  %v775_v37 = vld [vmem:[%s1015_s3 + $0x30] sm:$0xff]  }
   0xd   :  { %661 = vmatprep.subr.bf16.mxu0 %v747_v10  ;;  %v776_v38 = vld [vmem:[%s1015_s3 + $0x38] sm:$0xff]   ;;  %v777_v39 = vld [vmem:[%s1016_s5] sm:$0xff]   ;;  %v778_v40 = vld [vmem:[%s1016_s5 + $0x8] sm:$0xff]  }
   0xe   :  { %v779_v41 = vld [vmem:[%s1016_s5 + $0x10] sm:$0xff]   ;;  %v780_v42 = vld [vmem:[%s1016_s5 + $0x18] sm:$0xff]   ;;  %v781_v43 = vld [vmem:[%s1016_s5 + $0x20] sm:$0xff]  }
   0xf   :  { %309 = vmatpush1.bf16.msra.mxu1 %v748_v11  ;;  %v782_v44 = vld [vmem:[%s1016_s5 + $0x28] sm:$0xff]   ;;  %v606_v47 = vld [vmem:[%s1017_s2] ss:$0 sm:$0xff]  ;;  %v783_v63 = vld [vmem:[%s1016_s5 + $0x30] sm:$0xff]   ;;  %v573_v11 = vlaneseq }
  0x10   :  { %662 = vmatpush3.bf16.msra.mxu0 %v749_v12  ;;  %310 = vmatprep.subr.bf16.mxu1 %v793_v0  ;;  %v637_v1 = vld [vmem:[%s1018_s4] ss:$0 sm:$0xff] }
  0x11   :  { %663 = vmatprep.subr.bf16.mxu0 %v750_v13  ;;  %v574_v12 = vand.u32 127, %v573_v11  ;;  %v646_v13 = vld [vmem:[%s1019_s6] ss:$0 sm:$0xff] }
  0x13   :  { %311 = vmatpush1.bf16.msra.mxu1 %v751_v14  ;;  %vm575_vm2 = vcmp.lt.s32.totalorder %v574_v12, 10 }
  0x14   :  { %664 = vmatpush3.bf16.msra.mxu0 %v752_v15  ;;  %312 = vmatprep.subr.bf16.mxu1 %v793_v0 }
  0x15   :  { %665 = vmatprep.subr.bf16.mxu0 %v753_v16 }
  0x17   :  { %313 = vmatpush1.bf16.msra.mxu1 %v754_v17 }
  0x18   :  { %666 = vmatpush3.bf16.msra.mxu0 %v755_v18  ;;  %314 = vmatprep.subr.bf16.mxu1 %v793_v0 }
  0x19   :  { %667 = vmatprep.subr.bf16.mxu0 %v756_v19 }
  0x1b   :  { %315 = vmatpush1.bf16.msra.mxu1 %v757_v20 }
  0x1c   :  { %668 = vmatpush3.bf16.msra.mxu0 %v758_v21  ;;  %316 = vmatprep.subr.bf16.mxu1 %v793_v0 }
  0x1d   :  { %669 = vmatprep.subr.bf16.mxu0 %v759_v22 }
  0x1f   :  { %317 = vmatpush1.bf16.msra.mxu1 %v760_v24 }
  0x20   :  { %670 = vmatpush3.bf16.msra.mxu0 %v761_v26  ;;  %318 = vmatprep.subr.bf16.mxu1 %v793_v0  ;;  %v784_v0 = vld [vmem:[%s1016_s5 + $0x38] sm:$0xff]  }
  0x21   :  { %695 = vmatprep.subr.bf16.mxu0 %v794_v30 }
  0x23   :  { %294 = vmatmul.mubr.bf16.vlgmr.msra.gmra.mrb[0].mxu0 %v762_v27  ;;  %319 = vmatpush1.bf16.msra.mxu1 %v765_v28 }
  0x24   :  { %696 = vmatpush3.bf16.msra.mxu0 %v769_v29  ;;  %715 = vmatprep.subr.bf16.mxu1 %v794_v30 }
  0x25   :  { %697 = vmatprep.subr.bf16.mxu0 %v794_v30  ;;  %711 = vmatprep.mubr.msk.bf16.mxu0 %vm795_vm1, %v794_v30 }
  0x26   :  { %335 = vmatmul.mubr.bf16.vlgmr.msra.gmra.mrb[0].mxu1 %v766_v31 }
  0x27   :  { %731 = vmatprep.mubr.msk.bf16.mxu1 %vm795_vm1, %v794_v30  ;;  %716 = vmatpush3.bf16.msra.mxu1 %v777_v39 }
  0x28   :  { %698 = vmatpush3.bf16.msra.mxu0 %v770_v32  ;;  %717 = vmatprep.subr.bf16.mxu1 %v794_v30 }
  0x29   :  { %699 = vmatprep.subr.bf16.mxu0 %v794_v30 }
  0x2b   :  { %718 = vmatpush3.bf16.msra.mxu1 %v778_v40 }
  0x2c   :  { %700 = vmatpush3.bf16.msra.mxu0 %v771_v33  ;;  %719 = vmatprep.subr.bf16.mxu1 %v794_v30 }
  0x2d   :  { %701 = vmatprep.subr.bf16.mxu0 %v794_v30 }
  0x2f   :  { %720 = vmatpush3.bf16.msra.mxu1 %v779_v41 }
  0x30   :  { %702 = vmatpush3.bf16.msra.mxu0 %v772_v34  ;;  %721 = vmatprep.subr.bf16.mxu1 %v794_v30 }
  0x31   :  { %703 = vmatprep.subr.bf16.mxu0 %v794_v30 }
  0x33   :  { %722 = vmatpush3.bf16.msra.mxu1 %v780_v42 }
  0x34   :  { %704 = vmatpush3.bf16.msra.mxu0 %v773_v35  ;;  %723 = vmatprep.subr.bf16.mxu1 %v794_v30 }
  0x35   :  { %705 = vmatprep.subr.bf16.mxu0 %v794_v30 }
  0x37   :  { %724 = vmatpush3.bf16.msra.mxu1 %v781_v43 }
  0x38   :  { %706 = vmatpush3.bf16.msra.mxu0 %v774_v36  ;;  %725 = vmatprep.subr.bf16.mxu1 %v794_v30 }
  0x39   :  { %707 = vmatprep.subr.bf16.mxu0 %v794_v30 }
  0x3b   :  { %726 = vmatpush3.bf16.msra.mxu1 %v782_v44 }
  0x3c   :  { %708 = vmatpush3.bf16.msra.mxu0 %v775_v37  ;;  %727 = vmatprep.subr.bf16.mxu1 %v794_v30 }
  0x3d   :  { %709 = vmatprep.subr.bf16.mxu0 %v794_v30 }
  0x3f   :  { %728 = vmatpush3.bf16.msra.mxu1 %v783_v63 }
  0x40   :  { %710 = vmatpush3.bf16.msra.mxu0 %v776_v38  ;;  %729 = vmatprep.subr.bf16.mxu1 %v794_v30 }
  0x43   :  { %730 = vmatpush3.bf16.msra.mxu1 %v784_v0 }
  0xf6   :  { %v671_v45 = vpop.f32.mrb[0].mxu0 }
  0xf7   :  { %v672_v46 = vpop.f32.mrb[1].mxu0 }
  0xf8   :  { %v673_v48 = vadd.f32 %v672_v46, %v671_v45  ;;  %v674_v49 = vpop.f32.mrb[2].mxu0 }
  0xf9   :  { %v675_v50 = vpop.f32.mrb[3].mxu0  ;;  %v336_v51 = vpop.f32.mrb[0].mxu1 }
  0xfa   :  { %v676_v52 = vadd.f32 %v675_v50, %v674_v49  ;;  %v296_v53 = vadd.f32 %v673_v48, %v606_v47  ;;  %v338_v54 = vpop.f32.mrb[1].mxu1 }
  0xfb   :  { %v339_v55 = vpop.f32.mrb[2].mxu1 }
  0xfc   :  { %v337_v56 = vadd.f32 %v336_v51, %v296_v53  ;;  %v299_v57 = vadd.f32 %v676_v52, %v606_v47  ;;  %v341_v58 = vpop.f32.mrb[3].mxu1 }
  0xfe   :  { %v340_v59 = vadd.f32 %v339_v55, %v299_v57  ;;  %v343_v60 = vmax.f32 %v337_v56, 0.0 }
 0x100   :  { %v344_v61 = vmax.f32 %v340_v59, 0.0 }
 0x102   :  { %v345_v62 = vpack.c.bf16 %v344_v61, %v343_v60 }
 0x104   :  { %712 = vmatmul.mubr.bf16.vlgmr.msra.gmra.mrb[4].mxu0 %v345_v62 }
 0x1d7   :  { %v451_v2 = vpop.f32.mrb[4].mxu0 }
 0x1d8   :  { %v452_v3 = vadd.f32 %v637_v1, %v451_v2  ;;  %v713_v4 = vpop.f32.mrb[5].mxu0 }
 0x1d9   :  { %v454_v5 = vpop.f32.mrb[6].mxu0 }
 0x1da   :  { %v455_v6 = vadd.f32 %v637_v1, %v454_v5  ;;  %v714_v7 = vpop.f32.mrb[7].mxu0  ;;  %v458_v8 = vmax.f32 %v452_v3, 0.0 }
 0x1dc   :  { %v459_v9 = vmax.f32 %v455_v6, 0.0 }
 0x1de   :  { %v460_v10 = vpack.c.bf16 %v459_v9, %v458_v8 }
 0x1e0   :  { %732 = vmatmul.mubr.bf16.vlgmr.msra.gmra.mrb[4].mxu1 %v460_v10 }
 0x2b3   :  { %v566_v14 = vpop.f32.mrb[4].mxu1 }
 0x2b4   :  { %v567_v15 = vadd.f32 %v646_v13, %v566_v14  ;;  %v733_v16 = vpop.f32.mrb[5].mxu1 }
 0x2b5   :  { %v569_v17 = vpop.f32.mrb[6].mxu1 }
 0x2b6   :  { %v570_v18 = vadd.f32 %v646_v13, %v569_v17  ;;  %v734_v19 = vpop.f32.mrb[7].mxu1  ;;  %v576_v20 = vsel %vm575_vm2, %v567_v15, -1e+30 }
 0x2b7   :  { %578 = vmax.xlane.f32.xlu0 %v576_v20 }
 0x2b8   :  { %v577_v21 = vsel %vm575_vm2, %v570_v18, -1e+30 }
 0x2bb   :  { %580 = vmax.xlane.f32.xlu0 %v577_v21 }
 0x344   :  { %v579_v22 = vpop.xlane.xlu0 %578 }
 0x345   :  { %v582_v23 = vsub.f32 %v576_v20, %v579_v22 }
 0x347   :  { %v584_v24 = vmul.f32 1.442695, %v582_v23 }
 0x348   :  { %v581_v25 = vpop.xlane.xlu0 %580 }
 0x349   :  { %v583_v26 = vsub.f32 %v577_v21, %v581_v25  ;;  %785 = vpow2.f32 %v584_v24 }
 0x34b   :  { %v586_v27 = vmul.f32 1.442695, %v583_v26 }
 0x34d   :  { %787 = vpow2.f32 %v586_v27 }
 0x353   :  { %v786_v28 = vpop.eup %785 }
 0x354   :  { %588 = vadd.xlane.f32.xlu1 %v786_v28 }
 0x357   :  { %v788_v29 = vpop.eup %787 }
 0x358   :  { %590 = vadd.xlane.f32.xlu1 %v788_v29 }
 0x3e1   :  { %v589_v30 = vpop.xlane.xlu1 %588 }
 0x3e2   :  { %789 = vlog2.f32 %v589_v30 }
 0x3e5   :  { %v591_v31 = vpop.xlane.xlu1 %590 }
 0x3e6   :  { %791 = vlog2.f32 %v591_v31 }
 0x3ec   :  { %v790_v32 = vpop.eup %789 }
 0x3ed   :  { %v593_v33 = vmul.f32 0.6931472, %v790_v32 }
 0x3ef   :  { %v596_v34 = vadd.f32 %v593_v33, %v579_v22 }
 0x3f0   :  { %v792_v35 = vpop.eup %791 }
 0x3f1   :  { %v598_v36 = vsub.f32 %v576_v20, %v596_v34  ;;  %v595_v37 = vmul.f32 0.6931472, %v792_v35 }
 0x3f3   :  { %600 = vst [vmem:[%s1020_s7] sm:$0xff] %v598_v36  ;;  %v597_v38 = vadd.f32 %v595_v37, %v581_v25 }
 0x3f5   :  { %v599_v39 = vsub.f32 %v577_v21, %v597_v38 }
 0x3f7   :  { %601 = vst [vmem:[%s1020_s7 + $0x8] sm:$0xff] %v599_v39 }

</bundles_post_ra>
